<compile_context>
chip_gen: v7x
topology: tpu7x:2x2x1
jax: 0.10.0
libtpu: 0.0.40
codegen_flags: <defaults>
</compile_context>

<pallas_src>
import functools

import jax
import jax.numpy as jnp
import numpy as np
from jax import lax
from jax.experimental import pallas as pl
from jax.experimental.pallas import tpu as pltpu


def _vmem_limit_bytes():
    # v5e/v6e: 128 MiB physical -> cap ~96 MiB; v7x: 64 MiB -> cap ~48 MiB.
    try:
        cap = pltpu.get_tpu_info().vmem_capacity_bytes
    except Exception:  # pragma: no cover - conservative fallback
        cap = 128 * 1024 * 1024
    return min(int(cap * 3 // 4), 96 * 1024 * 1024)


# ---------------------------------------------------------------------------
# Fused forward kernel: one grid step per batch element.
#   x_ref:    (N, C)            activations (cast to bf16 in-kernel)
#   wq/wk/wv: (H, C, D)  bf16   head-major qkv weights (scale folded into wq)
#   bias_ref: (H, N, N)  bf16   pre-gathered relative-position bias (resident)
#   wo_ref:   (H, D, oup) bf16  head-major output-projection weights
#   bo_ref:   (1, oup)   bf16   output-projection bias
#   o_ref:    (N, oup)          final output block
# ---------------------------------------------------------------------------
def _fused_attention_kernel(heads, x_ref, wq_ref, wk_ref, wv_ref, bias_ref,
                            wo_ref, bo_ref, o_ref):
    x = x_ref[...].astype(jnp.bfloat16)                      # (N, C)
    acc = jnp.zeros(o_ref.shape, jnp.float32)                # (N, oup)

    for h in range(heads):  # static, small head loop; leading-axis weight slices
        # per-head projections (bf16 MXU, f32 accumulate); scale is in wq
        q = jnp.dot(x, wq_ref[h], preferred_element_type=jnp.float32)  # (N, D)
        k = jnp.dot(x, wk_ref[h], preferred_element_type=jnp.float32)  # (N, D)
        v = jnp.dot(x, wv_ref[h], preferred_element_type=jnp.float32)  # (N, D)

        # scores = q @ k^T  (contract last dims — no XLU transpose)
        s = lax.dot_general(q.astype(jnp.bfloat16), k.astype(jnp.bfloat16),
                            (((1,), (1,)), ((), ())),
                            preferred_element_type=jnp.float32)        # (N, N)
        s = s + bias_ref[h].astype(jnp.float32)

        # numerically-stable softmax; EUP approximate reciprocal for the denom
        s = s - jnp.max(s, axis=-1, keepdims=True)
        p = jnp.exp(s)
        p = p * pl.reciprocal(jnp.sum(p, axis=-1, keepdims=True), approx=True)

        # attn @ V, then fold this head straight into the output projection
        oh = jnp.dot(p.astype(jnp.bfloat16), v.astype(jnp.bfloat16),
                     preferred_element_type=jnp.float32)               # (N, D)
        acc = acc + jnp.dot(oh.astype(jnp.bfloat16), wo_ref[h],
                            preferred_element_type=jnp.float32)        # (N, oup)

    o_ref[...] = (acc + bo_ref[...].astype(jnp.float32)).astype(o_ref.dtype)


# ---------------------------------------------------------------------------
# Init-time parameter repacking (done once, NOT per forward)
# ---------------------------------------------------------------------------
def make_relative_index(ih, iw):
    # Same math as the PyTorch __init__ (Swin-style relative position index).
    coords = jnp.stack(
        jnp.meshgrid(jnp.arange(ih), jnp.arange(iw), indexing="ij"))  # (2,ih,iw)
    coords = coords.reshape(2, -1)                        # (2, n)
    rel = coords[:, :, None] - coords[:, None, :]         # (2, n, n)
    rel = rel.at[0].add(ih - 1)
    rel = rel.at[1].add(iw - 1)
    rel = rel.at[0].multiply(2 * iw - 1)
    rel = jnp.transpose(rel, (1, 2, 0))                   # 'c h w -> h w c'
    return rel.sum(-1).reshape(-1)                        # (n*n,)


def init_params(key, inp, oup, image_size, heads, dim_head):
    ih, iw = image_size
    inner = heads * dim_head
    k1, k2, k3, k4 = jax.random.split(key, 4)
    # (module inits relative_bias_table to zeros; small randoms here so the
    #  gather/bias-add path is actually exercised — deterministic via PRNGKey)
    return {
        "w_qkv": 0.05 * jax.random.normal(k1, (inp, inner * 3), jnp.float32),
        "w_out": 0.05 * jax.random.normal(k2, (inner, oup), jnp.float32),
        "b_out": 0.05 * jax.random.normal(k3, (oup,), jnp.float32),
        "rel_bias_table": 0.05
        * jax.random.normal(k4, ((2 * ih - 1) * (2 * iw - 1), heads), jnp.float32),
    }


def prepare_attention(params, image_size, heads, dim_head):
    """One-time repack into the kernel layout:
       * head-major bf16 q/k/v/out weights (no lane-offset head slicing in-kernel)
       * softmax scale folded into the q weights
       * relative-position bias pre-gathered into a bf16 (H, N, N) table."""
    ih, iw = image_size
    n = ih * iw
    scale = dim_head ** (-0.5)
    w_qkv = params["w_qkv"]                                # (C, 3*inner)
    c = w_qkv.shape[0]
    oup = params["w_out"].shape[1]

    wq, wk, wv = jnp.split(w_qkv, 3, axis=-1)              # each (C, inner)
    to_heads = lambda w: jnp.transpose(
        w.reshape(c, heads, dim_head), (1, 0, 2))          # (H, C, D)
    wq = (to_heads(wq) * scale).astype(jnp.bfloat16)       # fold softmax scale
    wk = to_heads(wk).astype(jnp.bfloat16)
    wv = to_heads(wv).astype(jnp.bfloat16)
    wo = params["w_out"].reshape(heads, dim_head, oup).astype(jnp.bfloat16)
    bo = params["b_out"].reshape(1, oup).astype(jnp.bfloat16)

    rel_index = make_relative_index(ih, iw)                # (N*N,)
    rel_bias = params["rel_bias_table"][rel_index]         # (N*N, H)
    rel_bias = jnp.transpose(rel_bias.reshape(n, n, heads), (2, 0, 1))  # (H,N,N)
    rel_bias = rel_bias.astype(jnp.bfloat16)

    return {"wq": wq, "wk": wk, "wv": wv, "wo": wo, "bo": bo,
            "rel_bias": rel_bias}


# ---------------------------------------------------------------------------
# Forward: one fused pallas_call, grid over batch
# ---------------------------------------------------------------------------
def attention_forward(x, prepared, heads, dim_head):
    B, N, C = x.shape
    oup = prepared["wo"].shape[-1]
    kernel = functools.partial(_fused_attention_kernel, heads)
    # NOTE: for large N (49/196 typical for this module are still fine; "large"
    # means the (N,N) score tiles no longer fit comfortably — earlier on v7x's
    # 64 MiB VMEM) switch to a KV grid axis with flash-style online softmax.
    return pl.pallas_call(
        kernel,
        out_shape=jax.ShapeDtypeStruct((B, N, oup), x.dtype),
        grid=(B,),
        in_specs=[
            pl.BlockSpec((None, N, C), lambda b: (b, 0, 0)),               # x
            pl.BlockSpec((heads, C, dim_head), lambda b: (0, 0, 0)),       # wq (resident)
            pl.BlockSpec((heads, C, dim_head), lambda b: (0, 0, 0)),       # wk (resident)
            pl.BlockSpec((heads, C, dim_head), lambda b: (0, 0, 0)),       # wv (resident)
            pl.BlockSpec((heads, N, N), lambda b: (0, 0, 0)),              # rel bias (resident)
            pl.BlockSpec((heads, dim_head, oup), lambda b: (0, 0, 0)),     # wo (resident)
            pl.BlockSpec((1, oup), lambda b: (0, 0)),                      # bo (resident)
        ],
        out_specs=pl.BlockSpec((None, N, oup), lambda b: (b, 0, 0)),
        compiler_params=pltpu.CompilerParams(
            dimension_semantics=("parallel",),       # B>=2 keeps both v7x TCs busy
            vmem_limit_bytes=_vmem_limit_bytes(),
        ),
    )(x, prepared["wq"], prepared["wk"], prepared["wv"],
      prepared["rel_bias"], prepared["wo"], prepared["bo"])


# ---------------------------------------------------------------------------
# Pure-JAX f32 reference mirroring the PyTorch forward
# ---------------------------------------------------------------------------
def attention_reference(x, params, image_size, heads, dim_head):
    ih, iw = image_size
    B, N, C = x.shape
    inner = heads * dim_head
    scale = dim_head ** (-0.5)
    qkv = x @ params["w_qkv"]
    q, k, v = jnp.split(qkv, 3, axis=-1)
    rearr = lambda t: jnp.transpose(t.reshape(B, N, heads, dim_head), (0, 2, 1, 3))
    q, k, v = rearr(q), rearr(k), rearr(v)
    dots = jnp.einsum("bhnd,bhmd->bhnm", q, k) * scale
    rel_index = make_relative_index(ih, iw)
    rel_bias = params["rel_bias_table"][rel_index]
    rel_bias = jnp.transpose(rel_bias.reshape(N, N, heads), (2, 0, 1))[None]
    dots = dots + rel_bias
    attn = jax.nn.softmax(dots, axis=-1)
    out = jnp.einsum("bhnm,bhmd->bhnd", attn, v)
    out = jnp.transpose(out, (0, 2, 1, 3)).reshape(B, N, inner)
    return out @ params["w_out"] + params["b_out"]   # Dropout(0.0) == identity


# ---------------------------------------------------------------------------
if __name__ == "__main__":
    B = 2
    inp, oup = 32, 32
    image_size = (4, 4)          # -> N = 16 tokens
    heads, dim_head = 4, 32      # inner_dim = 128 (projection branch is active)

    key = jax.random.PRNGKey(0)
    kx, kp = jax.random.split(key)
    N = image_size[0] * image_size[1]
    x = jax.random.normal(kx, (B, N, inp), jnp.float32)
    params = init_params(kp, inp, oup, image_size, heads, dim_head)

    prepared = prepare_attention(params, image_size, heads, dim_head)  # init-time
    out = attention_forward(x, prepared, heads, dim_head)
    out = jax.block_until_ready(out)

    ref = attention_reference(x, params, image_size, heads, dim_head)
    # bf16 MXU inputs (f32 accumulation) + EUP approx reciprocal are intentional;
    # tolerance sized accordingly (observed error ~1e-3 at these magnitudes).
    np.testing.assert_allclose(np.asarray(out), np.asarray(ref), rtol=2e-2, atol=2e-2)

    print("KERNEL_OK")
</pallas_src>

<mosaic_0001>
module attributes {stable_mosaic.version = 11 : i64} {
  func.func @_fused_attention_kernel(%arg0: i32, %arg1: memref<1x16x32xf32, #tpu.memory_space<vmem>>, %arg2: memref<4x32x32xbf16, #tpu.memory_space<vmem>>, %arg3: memref<4x32x32xbf16, #tpu.memory_space<vmem>>, %arg4: memref<4x32x32xbf16, #tpu.memory_space<vmem>>, %arg5: memref<4x16x16xbf16, #tpu.memory_space<vmem>>, %arg6: memref<4x32x32xbf16, #tpu.memory_space<vmem>>, %arg7: memref<1x32xbf16, #tpu.memory_space<vmem>>, %arg8: memref<1x16x32xf32, #tpu.memory_space<vmem>>) attributes {dimension_semantics = [#tpu.dimension_semantics<parallel>], iteration_bounds = array<i64: 2>, scalar_prefetch = 0 : i64, scratch_operands = 0 : i64, tpu.core_type = #tpu.core_type<tc>, window_params = [{transform_indices = @transform_0, window_bounds = array<i64: 1, 16, 32>}, {pipeline_mode = #tpu.pipeline_mode<synchronous>, transform_indices = @transform_1, window_bounds = array<i64: 4, 32, 32>}, {pipeline_mode = #tpu.pipeline_mode<synchronous>, transform_indices = @transform_2, window_bounds = array<i64: 4, 32, 32>}, {pipeline_mode = #tpu.pipeline_mode<synchronous>, transform_indices = @transform_3, window_bounds = array<i64: 4, 32, 32>}, {pipeline_mode = #tpu.pipeline_mode<synchronous>, transform_indices = @transform_4, window_bounds = array<i64: 4, 16, 16>}, {pipeline_mode = #tpu.pipeline_mode<synchronous>, transform_indices = @transform_5, window_bounds = array<i64: 4, 32, 32>}, {pipeline_mode = #tpu.pipeline_mode<synchronous>, transform_indices = @transform_6, window_bounds = array<i64: 1, 32>}, {transform_indices = @transform_7, window_bounds = array<i64: 1, 16, 32>}]} {
    %c0 = arith.constant 0 : index
    %c0_0 = arith.constant 0 : index
    %c0_1 = arith.constant 0 : index
    %0 = vector.load %arg1[%c0, %c0_0, %c0_1] : memref<1x16x32xf32, #tpu.memory_space<vmem>>, vector<1x16x32xf32>
    %1 = vector.shape_cast %0 : vector<1x16x32xf32> to vector<16x32xf32>
    %2 = arith.truncf %1 : vector<16x32xf32> to vector<16x32xbf16>
    %cst = arith.constant 0.000000e+00 : f32
    %3 = vector.broadcast %cst : f32 to vector<16x32xf32>
    %c0_2 = arith.constant 0 : index
    %c0_3 = arith.constant 0 : index
    %c0_4 = arith.constant 0 : index
    %4 = vector.load %arg2[%c0_2, %c0_3, %c0_4] : memref<4x32x32xbf16, #tpu.memory_space<vmem>>, vector<1x32x32xbf16>
    %5 = vector.shape_cast %4 : vector<1x32x32xbf16> to vector<32x32xbf16>
    %cst_5 = arith.constant dense<0.000000e+00> : vector<16x32xf32>
    %6 = tpu.matmul %2, %5, %cst_5 {dimension_numbers = #tpu.dot_dimension_numbers<[1], [0], [0], [1], [0, 0, 1, 1], [], []>} : vector<16x32xbf16>, vector<32x32xbf16>, vector<16x32xf32> -> vector<16x32xf32>
    %c0_6 = arith.constant 0 : index
    %c0_7 = arith.constant 0 : index
    %c0_8 = arith.constant 0 : index
    %7 = vector.load %arg3[%c0_6, %c0_7, %c0_8] : memref<4x32x32xbf16, #tpu.memory_space<vmem>>, vector<1x32x32xbf16>
    %8 = vector.shape_cast %7 : vector<1x32x32xbf16> to vector<32x32xbf16>
    %cst_9 = arith.constant dense<0.000000e+00> : vector<16x32xf32>
    %9 = tpu.matmul %2, %8, %cst_9 {dimension_numbers = #tpu.dot_dimension_numbers<[1], [0], [0], [1], [0, 0, 1, 1], [], []>} : vector<16x32xbf16>, vector<32x32xbf16>, vector<16x32xf32> -> vector<16x32xf32>
    %c0_10 = arith.constant 0 : index
    %c0_11 = arith.constant 0 : index
    %c0_12 = arith.constant 0 : index
    %10 = vector.load %arg4[%c0_10, %c0_11, %c0_12] : memref<4x32x32xbf16, #tpu.memory_space<vmem>>, vector<1x32x32xbf16>
    %11 = vector.shape_cast %10 : vector<1x32x32xbf16> to vector<32x32xbf16>
    %cst_13 = arith.constant dense<0.000000e+00> : vector<16x32xf32>
    %12 = tpu.matmul %2, %11, %cst_13 {dimension_numbers = #tpu.dot_dimension_numbers<[1], [0], [0], [1], [0, 0, 1, 1], [], []>} : vector<16x32xbf16>, vector<32x32xbf16>, vector<16x32xf32> -> vector<16x32xf32>
    %13 = arith.truncf %6 : vector<16x32xf32> to vector<16x32xbf16>
    %14 = arith.truncf %9 : vector<16x32xf32> to vector<16x32xbf16>
    %cst_14 = arith.constant dense<0.000000e+00> : vector<16x16xf32>
    %15 = tpu.matmul %13, %14, %cst_14 {dimension_numbers = #tpu.dot_dimension_numbers<[1], [1], [0], [0], [0, 0, 1, 0], [], []>} : vector<16x32xbf16>, vector<16x32xbf16>, vector<16x16xf32> -> vector<16x16xf32>
    %c0_15 = arith.constant 0 : index
    %c0_16 = arith.constant 0 : index
    %c0_17 = arith.constant 0 : index
    %16 = vector.load %arg5[%c0_15, %c0_16, %c0_17] : memref<4x16x16xbf16, #tpu.memory_space<vmem>>, vector<1x16x16xbf16>
    %17 = vector.shape_cast %16 : vector<1x16x16xbf16> to vector<16x16xbf16>
    %18 = arith.extf %17 : vector<16x16xbf16> to vector<16x16xf32>
    %19 = arith.addf %15, %18 : vector<16x16xf32>
    %cst_18 = arith.constant dense<0xFF800000> : vector<16xf32>
    %20 = vector.multi_reduction <maximumf>, %19, %cst_18 [1] : vector<16x16xf32> to vector<16xf32>
    %21 = vector.shape_cast %20 : vector<16xf32> to vector<16x1xf32>
    %22 = vector.broadcast %21 : vector<16x1xf32> to vector<16x16xf32>
    %23 = arith.subf %19, %22 : vector<16x16xf32>
    %24 = math.exp %23 : vector<16x16xf32>
    %cst_19 = arith.constant dense<0.000000e+00> : vector<16xf32>
    %25 = vector.multi_reduction <add>, %24, %cst_19 [1] : vector<16x16xf32> to vector<16xf32>
    %26 = vector.shape_cast %25 : vector<16xf32> to vector<16x1xf32>
    %27 = tpu.reciprocal %26 {approx = true} : vector<16x1xf32> -> vector<16x1xf32>
    %28 = vector.broadcast %27 : vector<16x1xf32> to vector<16x16xf32>
    %29 = arith.mulf %24, %28 : vector<16x16xf32>
    %30 = arith.truncf %29 : vector<16x16xf32> to vector<16x16xbf16>
    %31 = arith.truncf %12 : vector<16x32xf32> to vector<16x32xbf16>
    %cst_20 = arith.constant dense<0.000000e+00> : vector<16x32xf32>
    %32 = tpu.matmul %30, %31, %cst_20 {dimension_numbers = #tpu.dot_dimension_numbers<[1], [0], [0], [1], [0, 0, 1, 1], [], []>} : vector<16x16xbf16>, vector<16x32xbf16>, vector<16x32xf32> -> vector<16x32xf32>
    %33 = arith.truncf %32 : vector<16x32xf32> to vector<16x32xbf16>
    %c0_21 = arith.constant 0 : index
    %c0_22 = arith.constant 0 : index
    %c0_23 = arith.constant 0 : index
    %34 = vector.load %arg6[%c0_21, %c0_22, %c0_23] : memref<4x32x32xbf16, #tpu.memory_space<vmem>>, vector<1x32x32xbf16>
    %35 = vector.shape_cast %34 : vector<1x32x32xbf16> to vector<32x32xbf16>
    %cst_24 = arith.constant dense<0.000000e+00> : vector<16x32xf32>
    %36 = tpu.matmul %33, %35, %cst_24 {dimension_numbers = #tpu.dot_dimension_numbers<[1], [0], [0], [1], [0, 0, 1, 1], [], []>} : vector<16x32xbf16>, vector<32x32xbf16>, vector<16x32xf32> -> vector<16x32xf32>
    %37 = arith.addf %3, %36 : vector<16x32xf32>
    %c1 = arith.constant 1 : index
    %c0_25 = arith.constant 0 : index
    %c0_26 = arith.constant 0 : index
    %38 = vector.load %arg2[%c1, %c0_25, %c0_26] : memref<4x32x32xbf16, #tpu.memory_space<vmem>>, vector<1x32x32xbf16>
    %39 = vector.shape_cast %38 : vector<1x32x32xbf16> to vector<32x32xbf16>
    %cst_27 = arith.constant dense<0.000000e+00> : vector<16x32xf32>
    %40 = tpu.matmul %2, %39, %cst_27 {dimension_numbers = #tpu.dot_dimension_numbers<[1], [0], [0], [1], [0, 0, 1, 1], [], []>} : vector<16x32xbf16>, vector<32x32xbf16>, vector<16x32xf32> -> vector<16x32xf32>
    %c1_28 = arith.constant 1 : index
    %c0_29 = arith.constant 0 : index
    %c0_30 = arith.constant 0 : index
    %41 = vector.load %arg3[%c1_28, %c0_29, %c0_30] : memref<4x32x32xbf16, #tpu.memory_space<vmem>>, vector<1x32x32xbf16>
    %42 = vector.shape_cast %41 : vector<1x32x32xbf16> to vector<32x32xbf16>
    %cst_31 = arith.constant dense<0.000000e+00> : vector<16x32xf32>
    %43 = tpu.matmul %2, %42, %cst_31 {dimension_numbers = #tpu.dot_dimension_numbers<[1], [0], [0], [1], [0, 0, 1, 1], [], []>} : vector<16x32xbf16>, vector<32x32xbf16>, vector<16x32xf32> -> vector<16x32xf32>
    %c1_32 = arith.constant 1 : index
    %c0_33 = arith.constant 0 : index
    %c0_34 = arith.constant 0 : index
    %44 = vector.load %arg4[%c1_32, %c0_33, %c0_34] : memref<4x32x32xbf16, #tpu.memory_space<vmem>>, vector<1x32x32xbf16>
    %45 = vector.shape_cast %44 : vector<1x32x32xbf16> to vector<32x32xbf16>
    %cst_35 = arith.constant dense<0.000000e+00> : vector<16x32xf32>
    %46 = tpu.matmul %2, %45, %cst_35 {dimension_numbers = #tpu.dot_dimension_numbers<[1], [0], [0], [1], [0, 0, 1, 1], [], []>} : vector<16x32xbf16>, vector<32x32xbf16>, vector<16x32xf32> -> vector<16x32xf32>
    %47 = arith.truncf %40 : vector<16x32xf32> to vector<16x32xbf16>
    %48 = arith.truncf %43 : vector<16x32xf32> to vector<16x32xbf16>
    %cst_36 = arith.constant dense<0.000000e+00> : vector<16x16xf32>
    %49 = tpu.matmul %47, %48, %cst_36 {dimension_numbers = #tpu.dot_dimension_numbers<[1], [1], [0], [0], [0, 0, 1, 0], [], []>} : vector<16x32xbf16>, vector<16x32xbf16>, vector<16x16xf32> -> vector<16x16xf32>
    %c1_37 = arith.constant 1 : index
    %c0_38 = arith.constant 0 : index
    %c0_39 = arith.constant 0 : index
    %50 = vector.load %arg5[%c1_37, %c0_38, %c0_39] : memref<4x16x16xbf16, #tpu.memory_space<vmem>>, vector<1x16x16xbf16>
    %51 = vector.shape_cast %50 : vector<1x16x16xbf16> to vector<16x16xbf16>
    %52 = arith.extf %51 : vector<16x16xbf16> to vector<16x16xf32>
    %53 = arith.addf %49, %52 : vector<16x16xf32>
    %cst_40 = arith.constant dense<0xFF800000> : vector<16xf32>
    %54 = vector.multi_reduction <maximumf>, %53, %cst_40 [1] : vector<16x16xf32> to vector<16xf32>
    %55 = vector.shape_cast %54 : vector<16xf32> to vector<16x1xf32>
    %56 = vector.broadcast %55 : vector<16x1xf32> to vector<16x16xf32>
    %57 = arith.subf %53, %56 : vector<16x16xf32>
    %58 = math.exp %57 : vector<16x16xf32>
    %cst_41 = arith.constant dense<0.000000e+00> : vector<16xf32>
    %59 = vector.multi_reduction <add>, %58, %cst_41 [1] : vector<16x16xf32> to vector<16xf32>
    %60 = vector.shape_cast %59 : vector<16xf32> to vector<16x1xf32>
    %61 = tpu.reciprocal %60 {approx = true} : vector<16x1xf32> -> vector<16x1xf32>
    %62 = vector.broadcast %61 : vector<16x1xf32> to vector<16x16xf32>
    %63 = arith.mulf %58, %62 : vector<16x16xf32>
    %64 = arith.truncf %63 : vector<16x16xf32> to vector<16x16xbf16>
    %65 = arith.truncf %46 : vector<16x32xf32> to vector<16x32xbf16>
    %cst_42 = arith.constant dense<0.000000e+00> : vector<16x32xf32>
    %66 = tpu.matmul %64, %65, %cst_42 {dimension_numbers = #tpu.dot_dimension_numbers<[1], [0], [0], [1], [0, 0, 1, 1], [], []>} : vector<16x16xbf16>, vector<16x32xbf16>, vector<16x32xf32> -> vector<16x32xf32>
    %67 = arith.truncf %66 : vector<16x32xf32> to vector<16x32xbf16>
    %c1_43 = arith.constant 1 : index
    %c0_44 = arith.constant 0 : index
    %c0_45 = arith.constant 0 : index
    %68 = vector.load %arg6[%c1_43, %c0_44, %c0_45] : memref<4x32x32xbf16, #tpu.memory_space<vmem>>, vector<1x32x32xbf16>
    %69 = vector.shape_cast %68 : vector<1x32x32xbf16> to vector<32x32xbf16>
    %cst_46 = arith.constant dense<0.000000e+00> : vector<16x32xf32>
    %70 = tpu.matmul %67, %69, %cst_46 {dimension_numbers = #tpu.dot_dimension_numbers<[1], [0], [0], [1], [0, 0, 1, 1], [], []>} : vector<16x32xbf16>, vector<32x32xbf16>, vector<16x32xf32> -> vector<16x32xf32>
    %71 = arith.addf %37, %70 : vector<16x32xf32>
    %c2 = arith.constant 2 : index
    %c0_47 = arith.constant 0 : index
    %c0_48 = arith.constant 0 : index
    %72 = vector.load %arg2[%c2, %c0_47, %c0_48] : memref<4x32x32xbf16, #tpu.memory_space<vmem>>, vector<1x32x32xbf16>
    %73 = vector.shape_cast %72 : vector<1x32x32xbf16> to vector<32x32xbf16>
    %cst_49 = arith.constant dense<0.000000e+00> : vector<16x32xf32>
    %74 = tpu.matmul %2, %73, %cst_49 {dimension_numbers = #tpu.dot_dimension_numbers<[1], [0], [0], [1], [0, 0, 1, 1], [], []>} : vector<16x32xbf16>, vector<32x32xbf16>, vector<16x32xf32> -> vector<16x32xf32>
    %c2_50 = arith.constant 2 : index
    %c0_51 = arith.constant 0 : index
    %c0_52 = arith.constant 0 : index
    %75 = vector.load %arg3[%c2_50, %c0_51, %c0_52] : memref<4x32x32xbf16, #tpu.memory_space<vmem>>, vector<1x32x32xbf16>
    %76 = vector.shape_cast %75 : vector<1x32x32xbf16> to vector<32x32xbf16>
    %cst_53 = arith.constant dense<0.000000e+00> : vector<16x32xf32>
    %77 = tpu.matmul %2, %76, %cst_53 {dimension_numbers = #tpu.dot_dimension_numbers<[1], [0], [0], [1], [0, 0, 1, 1], [], []>} : vector<16x32xbf16>, vector<32x32xbf16>, vector<16x32xf32> -> vector<16x32xf32>
    %c2_54 = arith.constant 2 : index
    %c0_55 = arith.constant 0 : index
    %c0_56 = arith.constant 0 : index
    %78 = vector.load %arg4[%c2_54, %c0_55, %c0_56] : memref<4x32x32xbf16, #tpu.memory_space<vmem>>, vector<1x32x32xbf16>
    %79 = vector.shape_cast %78 : vector<1x32x32xbf16> to vector<32x32xbf16>
    %cst_57 = arith.constant dense<0.000000e+00> : vector<16x32xf32>
    %80 = tpu.matmul %2, %79, %cst_57 {dimension_numbers = #tpu.dot_dimension_numbers<[1], [0], [0], [1], [0, 0, 1, 1], [], []>} : vector<16x32xbf16>, vector<32x32xbf16>, vector<16x32xf32> -> vector<16x32xf32>
    %81 = arith.truncf %74 : vector<16x32xf32> to vector<16x32xbf16>
    %82 = arith.truncf %77 : vector<16x32xf32> to vector<16x32xbf16>
    %cst_58 = arith.constant dense<0.000000e+00> : vector<16x16xf32>
    %83 = tpu.matmul %81, %82, %cst_58 {dimension_numbers = #tpu.dot_dimension_numbers<[1], [1], [0], [0], [0, 0, 1, 0], [], []>} : vector<16x32xbf16>, vector<16x32xbf16>, vector<16x16xf32> -> vector<16x16xf32>
    %c2_59 = arith.constant 2 : index
    %c0_60 = arith.constant 0 : index
    %c0_61 = arith.constant 0 : index
    %84 = vector.load %arg5[%c2_59, %c0_60, %c0_61] : memref<4x16x16xbf16, #tpu.memory_space<vmem>>, vector<1x16x16xbf16>
    %85 = vector.shape_cast %84 : vector<1x16x16xbf16> to vector<16x16xbf16>
    %86 = arith.extf %85 : vector<16x16xbf16> to vector<16x16xf32>
    %87 = arith.addf %83, %86 : vector<16x16xf32>
    %cst_62 = arith.constant dense<0xFF800000> : vector<16xf32>
    %88 = vector.multi_reduction <maximumf>, %87, %cst_62 [1] : vector<16x16xf32> to vector<16xf32>
    %89 = vector.shape_cast %88 : vector<16xf32> to vector<16x1xf32>
    %90 = vector.broadcast %89 : vector<16x1xf32> to vector<16x16xf32>
    %91 = arith.subf %87, %90 : vector<16x16xf32>
    %92 = math.exp %91 : vector<16x16xf32>
    %cst_63 = arith.constant dense<0.000000e+00> : vector<16xf32>
    %93 = vector.multi_reduction <add>, %92, %cst_63 [1] : vector<16x16xf32> to vector<16xf32>
    %94 = vector.shape_cast %93 : vector<16xf32> to vector<16x1xf32>
    %95 = tpu.reciprocal %94 {approx = true} : vector<16x1xf32> -> vector<16x1xf32>
    %96 = vector.broadcast %95 : vector<16x1xf32> to vector<16x16xf32>
    %97 = arith.mulf %92, %96 : vector<16x16xf32>
    %98 = arith.truncf %97 : vector<16x16xf32> to vector<16x16xbf16>
    %99 = arith.truncf %80 : vector<16x32xf32> to vector<16x32xbf16>
    %cst_64 = arith.constant dense<0.000000e+00> : vector<16x32xf32>
    %100 = tpu.matmul %98, %99, %cst_64 {dimension_numbers = #tpu.dot_dimension_numbers<[1], [0], [0], [1], [0, 0, 1, 1], [], []>} : vector<16x16xbf16>, vector<16x32xbf16>, vector<16x32xf32> -> vector<16x32xf32>
    %101 = arith.truncf %100 : vector<16x32xf32> to vector<16x32xbf16>
    %c2_65 = arith.constant 2 : index
    %c0_66 = arith.constant 0 : index
    %c0_67 = arith.constant 0 : index
    %102 = vector.load %arg6[%c2_65, %c0_66, %c0_67] : memref<4x32x32xbf16, #tpu.memory_space<vmem>>, vector<1x32x32xbf16>
    %103 = vector.shape_cast %102 : vector<1x32x32xbf16> to vector<32x32xbf16>
    %cst_68 = arith.constant dense<0.000000e+00> : vector<16x32xf32>
    %104 = tpu.matmul %101, %103, %cst_68 {dimension_numbers = #tpu.dot_dimension_numbers<[1], [0], [0], [1], [0, 0, 1, 1], [], []>} : vector<16x32xbf16>, vector<32x32xbf16>, vector<16x32xf32> -> vector<16x32xf32>
    %105 = arith.addf %71, %104 : vector<16x32xf32>
    %c3 = arith.constant 3 : index
    %c0_69 = arith.constant 0 : index
    %c0_70 = arith.constant 0 : index
    %106 = vector.load %arg2[%c3, %c0_69, %c0_70] : memref<4x32x32xbf16, #tpu.memory_space<vmem>>, vector<1x32x32xbf16>
    %107 = vector.shape_cast %106 : vector<1x32x32xbf16> to vector<32x32xbf16>
    %cst_71 = arith.constant dense<0.000000e+00> : vector<16x32xf32>
    %108 = tpu.matmul %2, %107, %cst_71 {dimension_numbers = #tpu.dot_dimension_numbers<[1], [0], [0], [1], [0, 0, 1, 1], [], []>} : vector<16x32xbf16>, vector<32x32xbf16>, vector<16x32xf32> -> vector<16x32xf32>
    %c3_72 = arith.constant 3 : index
    %c0_73 = arith.constant 0 : index
    %c0_74 = arith.constant 0 : index
    %109 = vector.load %arg3[%c3_72, %c0_73, %c0_74] : memref<4x32x32xbf16, #tpu.memory_space<vmem>>, vector<1x32x32xbf16>
    %110 = vector.shape_cast %109 : vector<1x32x32xbf16> to vector<32x32xbf16>
    %cst_75 = arith.constant dense<0.000000e+00> : vector<16x32xf32>
    %111 = tpu.matmul %2, %110, %cst_75 {dimension_numbers = #tpu.dot_dimension_numbers<[1], [0], [0], [1], [0, 0, 1, 1], [], []>} : vector<16x32xbf16>, vector<32x32xbf16>, vector<16x32xf32> -> vector<16x32xf32>
    %c3_76 = arith.constant 3 : index
    %c0_77 = arith.constant 0 : index
    %c0_78 = arith.constant 0 : index
    %112 = vector.load %arg4[%c3_76, %c0_77, %c0_78] : memref<4x32x32xbf16, #tpu.memory_space<vmem>>, vector<1x32x32xbf16>
    %113 = vector.shape_cast %112 : vector<1x32x32xbf16> to vector<32x32xbf16>
    %cst_79 = arith.constant dense<0.000000e+00> : vector<16x32xf32>
    %114 = tpu.matmul %2, %113, %cst_79 {dimension_numbers = #tpu.dot_dimension_numbers<[1], [0], [0], [1], [0, 0, 1, 1], [], []>} : vector<16x32xbf16>, vector<32x32xbf16>, vector<16x32xf32> -> vector<16x32xf32>
    %115 = arith.truncf %108 : vector<16x32xf32> to vector<16x32xbf16>
    %116 = arith.truncf %111 : vector<16x32xf32> to vector<16x32xbf16>
    %cst_80 = arith.constant dense<0.000000e+00> : vector<16x16xf32>
    %117 = tpu.matmul %115, %116, %cst_80 {dimension_numbers = #tpu.dot_dimension_numbers<[1], [1], [0], [0], [0, 0, 1, 0], [], []>} : vector<16x32xbf16>, vector<16x32xbf16>, vector<16x16xf32> -> vector<16x16xf32>
    %c3_81 = arith.constant 3 : index
    %c0_82 = arith.constant 0 : index
    %c0_83 = arith.constant 0 : index
    %118 = vector.load %arg5[%c3_81, %c0_82, %c0_83] : memref<4x16x16xbf16, #tpu.memory_space<vmem>>, vector<1x16x16xbf16>
    %119 = vector.shape_cast %118 : vector<1x16x16xbf16> to vector<16x16xbf16>
    %120 = arith.extf %119 : vector<16x16xbf16> to vector<16x16xf32>
    %121 = arith.addf %117, %120 : vector<16x16xf32>
    %cst_84 = arith.constant dense<0xFF800000> : vector<16xf32>
    %122 = vector.multi_reduction <maximumf>, %121, %cst_84 [1] : vector<16x16xf32> to vector<16xf32>
    %123 = vector.shape_cast %122 : vector<16xf32> to vector<16x1xf32>
    %124 = vector.broadcast %123 : vector<16x1xf32> to vector<16x16xf32>
    %125 = arith.subf %121, %124 : vector<16x16xf32>
    %126 = math.exp %125 : vector<16x16xf32>
    %cst_85 = arith.constant dense<0.000000e+00> : vector<16xf32>
    %127 = vector.multi_reduction <add>, %126, %cst_85 [1] : vector<16x16xf32> to vector<16xf32>
    %128 = vector.shape_cast %127 : vector<16xf32> to vector<16x1xf32>
    %129 = tpu.reciprocal %128 {approx = true} : vector<16x1xf32> -> vector<16x1xf32>
    %130 = vector.broadcast %129 : vector<16x1xf32> to vector<16x16xf32>
    %131 = arith.mulf %126, %130 : vector<16x16xf32>
    %132 = arith.truncf %131 : vector<16x16xf32> to vector<16x16xbf16>
    %133 = arith.truncf %114 : vector<16x32xf32> to vector<16x32xbf16>
    %cst_86 = arith.constant dense<0.000000e+00> : vector<16x32xf32>
    %134 = tpu.matmul %132, %133, %cst_86 {dimension_numbers = #tpu.dot_dimension_numbers<[1], [0], [0], [1], [0, 0, 1, 1], [], []>} : vector<16x16xbf16>, vector<16x32xbf16>, vector<16x32xf32> -> vector<16x32xf32>
    %135 = arith.truncf %134 : vector<16x32xf32> to vector<16x32xbf16>
    %c3_87 = arith.constant 3 : index
    %c0_88 = arith.constant 0 : index
    %c0_89 = arith.constant 0 : index
    %136 = vector.load %arg6[%c3_87, %c0_88, %c0_89] : memref<4x32x32xbf16, #tpu.memory_space<vmem>>, vector<1x32x32xbf16>
    %137 = vector.shape_cast %136 : vector<1x32x32xbf16> to vector<32x32xbf16>
    %cst_90 = arith.constant dense<0.000000e+00> : vector<16x32xf32>
    %138 = tpu.matmul %135, %137, %cst_90 {dimension_numbers = #tpu.dot_dimension_numbers<[1], [0], [0], [1], [0, 0, 1, 1], [], []>} : vector<16x32xbf16>, vector<32x32xbf16>, vector<16x32xf32> -> vector<16x32xf32>
    %139 = arith.addf %105, %138 : vector<16x32xf32>
    %c0_91 = arith.constant 0 : index
    %c0_92 = arith.constant 0 : index
    %140 = vector.load %arg7[%c0_91, %c0_92] : memref<1x32xbf16, #tpu.memory_space<vmem>>, vector<1x32xbf16>
    %141 = arith.extf %140 : vector<1x32xbf16> to vector<1x32xf32>
    %142 = vector.broadcast %141 : vector<1x32xf32> to vector<16x32xf32>
    %143 = arith.addf %139, %142 : vector<16x32xf32>
    %c0_93 = arith.constant 0 : index
    %c0_94 = arith.constant 0 : index
    %c0_95 = arith.constant 0 : index
    %144 = vector.load %arg8[%c0_93, %c0_94, %c0_95] : memref<1x16x32xf32, #tpu.memory_space<vmem>>, vector<1x16x32xf32>
    %145 = vector.shape_cast %144 : vector<1x16x32xf32> to vector<16x32xf32>
    %146 = vector.shape_cast %143 : vector<16x32xf32> to vector<1x16x32xf32>
    tpu.vector_store %arg8[%c0_93, %c0_94, %c0_95], %146 {strides = array<i32>} : memref<1x16x32xf32, #tpu.memory_space<vmem>>, vector<1x16x32xf32>,
    return
  }
  func.func @transform_0(%arg0: i32) -> (i32, i32, i32) {
    %c0_i32 = arith.constant 0 : i32
    %c0_i32_0 = arith.constant 0 : i32
    %c0_i32_1 = arith.constant 0 : i32
    return %arg0, %c0_i32, %c0_i32_0 : i32, i32, i32
  }
  func.func @transform_1(%arg0: i32) -> (i32, i32, i32) {
    %c0_i32 = arith.constant 0 : i32
    %c0_i32_0 = arith.constant 0 : i32
    %c0_i32_1 = arith.constant 0 : i32
    %c0_i32_2 = arith.constant 0 : i32
    return %c0_i32, %c0_i32_0, %c0_i32_1 : i32, i32, i32
  }
  func.func @transform_2(%arg0: i32) -> (i32, i32, i32) {
    %c0_i32 = arith.constant 0 : i32
    %c0_i32_0 = arith.constant 0 : i32
    %c0_i32_1 = arith.constant 0 : i32
    %c0_i32_2 = arith.constant 0 : i32
    return %c0_i32, %c0_i32_0, %c0_i32_1 : i32, i32, i32
  }
  func.func @transform_3(%arg0: i32) -> (i32, i32, i32) {
    %c0_i32 = arith.constant 0 : i32
    %c0_i32_0 = arith.constant 0 : i32
    %c0_i32_1 = arith.constant 0 : i32
    %c0_i32_2 = arith.constant 0 : i32
    return %c0_i32, %c0_i32_0, %c0_i32_1 : i32, i32, i32
  }
  func.func @transform_4(%arg0: i32) -> (i32, i32, i32) {
    %c0_i32 = arith.constant 0 : i32
    %c0_i32_0 = arith.constant 0 : i32
    %c0_i32_1 = arith.constant 0 : i32
    %c0_i32_2 = arith.constant 0 : i32
    return %c0_i32, %c0_i32_0, %c0_i32_1 : i32, i32, i32
  }
  func.func @transform_5(%arg0: i32) -> (i32, i32, i32) {
    %c0_i32 = arith.constant 0 : i32
    %c0_i32_0 = arith.constant 0 : i32
    %c0_i32_1 = arith.constant 0 : i32
    %c0_i32_2 = arith.constant 0 : i32
    return %c0_i32, %c0_i32_0, %c0_i32_1 : i32, i32, i32
  }
  func.func @transform_6(%arg0: i32) -> (i32, i32) {
    %c0_i32 = arith.constant 0 : i32
    %c0_i32_0 = arith.constant 0 : i32
    %c0_i32_1 = arith.constant 0 : i32
    return %c0_i32, %c0_i32_0 : i32, i32
  }
  func.func @transform_7(%arg0: i32) -> (i32, i32, i32) {
    %c0_i32 = arith.constant 0 : i32
    %c0_i32_0 = arith.constant 0 : i32
    %c0_i32_1 = arith.constant 0 : i32
    return %arg0, %c0_i32, %c0_i32_0 : i32, i32, i32
  }
}

</mosaic_0001>

<bundles_post_ra>
// kernel: tpu_custom_call.1
= control target key start
LH: loop header
LB: loop body
LE: loop exit
PB: predicated region body
PF: predicated region fallthrough
CT: control target
= control target key end

     0   :  { %12 = vsyncpa [#allocation3], 0  ;;  %s3342_s0 = inlined_call_operand.hbm [shape: f32[2,16,32], index: 0, kind: input, shape index: {}]   ;;  %s3343_s1 = inlined_call_operand.hbm [shape: bf16[4,32,32], index: 1, kind: input, shape index: {}]   ;;  %s3344_s2 = inlined_call_operand.hbm [shape: bf16[4,32,32], index: 2, kind: input, shape index: {}]   ;;  %s3345_s3 = inlined_call_operand.hbm [shape: bf16[4,32,32], index: 3, kind: input, shape index: {}]   ;;  %s3346_s4 = inlined_call_operand.hbm [shape: bf16[4,16,16], index: 4, kind: input, shape index: {}]   ;;  %s3347_s5 = inlined_call_operand.hbm [shape: bf16[4,32,32], index: 5, kind: input, shape index: {}]   ;;  %s3348_s6 = inlined_call_operand.hbm [shape: bf16[1,32], index: 6, kind: input, shape index: {}]   ;;  %s3349_s7 = inlined_call_operand.hbm [shape: f32[2,16,32], index: 7, kind: output, shape index: {}]  }
   0x1   :  { %14 = vsyncpa [#allocation3 + $0x1], 0 }
   0x2   :  { %15 = vsyncpa [#allocation6], 0 }
   0x3   :  { %16 = vsyncpa [#allocation9], 0 }
   0x4   :  { %17 = vsyncpa [#allocation12], 0 }
   0x5   :  { %18 = vsyncpa [#allocation4], 0 }
   0x6   :  { %20 = vsyncpa [#allocation4 + $0x1], 0  ;;  %s2829_s24 = smov 0   ;;  %s2831_s25 = smov 0  }
   0x7   :  { %s2833_s26 = smov 0   ;;  %s2835_s27 = smov 0  }
   0x8 LB: > { %s2773_s28 = smov [#allocation5]   ;;  %s2850_s30 = sadd.s32 4294967295, %s2771_s27   ;;  %s2771_s27 = sphi %s2835_s27, %s3375_s27   ;;  %s2767_s26 = sphi %s2833_s26, %s3374_s26   ;;  %s2763_s25 = sphi %s2831_s25, %s3373_s25   ;;  %s2759_s24 = sphi %s2829_s24, %s3372_s24  }
   0x9   : > { %s221_s29 = sshll.u32 %s2773_s28, 4  ;;  %p1977_p0 = scmp.ge.s32.totalorder %s2771_s27, 1  ;;  %s2855_s29 = int_to_ptr.vmem [resolvable:$true] %s221_s29 }
   0xa   : > { %p3350_p1 = scmp.eq.s32.totalorder %s2850_s30, 0  ;;  %p209_p2 = scmp.lt.s32.totalorder %s2771_s27, 3 }
   0xb   : > { %s2774_s9 = smov [#allocation8]   ;;  %s2775_s12 = smov [#allocation11]  }
   0xc   : > { %p2857_p3 = pnand %p1977_p0, %p209_p2  ;;  %s247_s10 = sshll.u32 %s2774_s9, 4  ;;  %s2870_s10 = int_to_ptr.vmem [resolvable:$true] %s247_s10 }
   0xd   : > { %s273_s13 = sshll.u32 %s2775_s12, 4  ;;  %s2495_s16 = scalar_lea.hbm %s3343_s1, 1024  ;;  %s2872_s13 = int_to_ptr.vmem [resolvable:$true] %s273_s13 }
   0xe   : > { %s3353_s8 = scalar_select %p2857_p3, 1, 0 }
   0xf   : > { %p2344_p5 = pneg %p2857_p3  ;;  %p2496_p7 = scmp.ne.s32.totalorder %s3343_s1, %s2495_s16 }
  0x10   : > { %p2502_p11 = scmp.lt.u32.totalorder %s2495_s16, %s3343_s1 }
  0x11   : > { %p2866_p6 = pnand %p2344_p5, %p3350_p1 }
  0x13   : > { %p2882_p8 = pneg %p2866_p6 }
  0x15   : > { %p2498_p9 = pnand %p2882_p8, %p2496_p7 }
  0x17   : > { %p2499_p10 = pneg %p2498_p9 }
  0x19   : > { %p2504_p12 = pnand %p2502_p11, %p2499_p10 }
  0x1b   : > { %2507 = shalt.err (!%p2504_p12)
}
  0x1c   : > { %s2508_s22 = scalar_lea.vmem %s2855_s29, 1024  ;;  %p2516_p5 = scmp.lt.s32.totalorder %s2855_s29, %s2855_s29 }
  0x1d   : > { %p2509_p13 = scmp.ne.s32.totalorder %s2855_s29, %s2508_s22  ;;  %p2517_p4 = scmp.lt.s32.totalorder %s2508_s22, %s2508_s22 }
  0x1f   : > { %p2511_p0 = pnand %p2509_p13, %p2882_p8  ;;  %p2518_p7 = por %p2517_p4, %p2516_p5 }
  0x21   : > { %p2512_p2 = pneg %p2511_p0 }
  0x23   : > { %p2519_p9 = pnand %p2518_p7, %p2512_p2 }
  0x25   : > { %2522 = shalt.err (!%p2519_p9)
}
  0x26   : > { %s2776_s23 = smov 64   ;;  %s2777_s28 = smov 4  }
  0x27   : > { %2347 = dma.hbm_to_vmem [thread:$0]  (!%p2866_p6), %s3343_s1, 1024, %s2855_s29, [#allocation6], %s2776_s23, %s2776_s23, %s2777_s28  }
  0x28   : > { %s2523_s16 = scalar_lea.hbm %s3345_s3, 1024 }
  0x29   : > { %p2524_p4 = scmp.ne.s32.totalorder %s3345_s3, %s2523_s16  ;;  %p2530_p12 = scmp.lt.u32.totalorder %s2523_s16, %s3345_s3 }
  0x2b   : > { %p2526_p10 = pnand %p2524_p4, %p2882_p8 }
  0x2d   : > { %p2527_p11 = pneg %p2526_p10 }
  0x2f   : > { %p2532_p13 = pnand %p2530_p12, %p2527_p11 }
  0x31   : > { %2535 = shalt.err (!%p2532_p13)
}
  0x32   : > { %s2536_s29 = scalar_lea.vmem %s2870_s10, 1024  ;;  %p2544_p7 = scmp.lt.s32.totalorder %s2870_s10, %s2870_s10 }
  0x33   : > { %p2537_p0 = scmp.ne.s32.totalorder %s2870_s10, %s2536_s29  ;;  %p2545_p9 = scmp.lt.s32.totalorder %s2536_s29, %s2536_s29 }
  0x35   : > { %p2539_p2 = pnand %p2537_p0, %p2882_p8  ;;  %p2546_p4 = por %p2545_p9, %p2544_p7 }
  0x37   : > { %p2540_p5 = pneg %p2539_p2 }
  0x39   : > { %p2547_p10 = pnand %p2546_p4, %p2540_p5 }
  0x3b   : > { %2550 = shalt.err (!%p2547_p10)
}
  0x3c   : > { %2353 = dma.hbm_to_vmem [thread:$0]  (!%p2866_p6), %s3345_s3, 1024, %s2870_s10, [#allocation9], %s2776_s23, %s2776_s23, %s2777_s28  }
  0x3d   : > { %s2551_s15 = scalar_lea.hbm %s3347_s5, 1024 }
  0x3e   : > { %p2552_p11 = scmp.ne.s32.totalorder %s3347_s5, %s2551_s15  ;;  %p2558_p0 = scmp.lt.u32.totalorder %s2551_s15, %s3347_s5 }
  0x40   : > { %p2554_p12 = pnand %p2552_p11, %p2882_p8 }
  0x42   : > { %p2555_p13 = pneg %p2554_p12 }
  0x44   : > { %p2560_p2 = pnand %p2558_p0, %p2555_p13 }
  0x46   : > { %2563 = shalt.err (!%p2560_p2)
}
  0x47   : > { %s2564_s10 = scalar_lea.vmem %s2872_s13, 1024  ;;  %p2572_p4 = scmp.lt.s32.totalorder %s2872_s13, %s2872_s13 }
  0x48   : > { %p2565_p5 = scmp.ne.s32.totalorder %s2872_s13, %s2564_s10  ;;  %p2573_p10 = scmp.lt.s32.totalorder %s2564_s10, %s2564_s10 }
  0x4a   : > { %p2567_p7 = pnand %p2565_p5, %p2882_p8  ;;  %p2574_p11 = por %p2573_p10, %p2572_p4 }
  0x4c   : > { %p2568_p9 = pneg %p2567_p7 }
  0x4e   : > { %p2575_p12 = pnand %p2574_p11, %p2568_p9 }
  0x50   : > { %2578 = shalt.err (!%p2575_p12)
}
  0x51   : > { %2359 = dma.hbm_to_vmem [thread:$0]  (!%p2866_p6), %s3347_s5, 1024, %s2872_s13, [#allocation12], %s2776_s23, %s2776_s23, %s2777_s28  }
  0x52   : > { %s2778_s22 = smov [#allocation7]   ;;  %s2779_s12 = smov [#allocation10]  }
  0x53   : > { %s234_s9 = sshll.u32 %s2778_s22, 4  ;;  %s260_s14 = sshll.u32 %s2779_s12, 4  ;;  %s235_s9 = int_to_ptr.vmem [resolvable:$true] %s234_s9  ;;  %s261_s14 = int_to_ptr.vmem [resolvable:$true] %s260_s14 }
  0x54   : > { %s2579_s17 = scalar_lea.hbm %s3344_s2, 1024 }
  0x55   : > { %p2580_p13 = scmp.ne.s32.totalorder %s3344_s2, %s2579_s17  ;;  %p2586_p5 = scmp.lt.u32.totalorder %s2579_s17, %s3344_s2 }
  0x57   : > { %p2582_p0 = pnand %p2580_p13, %p2882_p8 }
  0x59   : > { %p2583_p2 = pneg %p2582_p0 }
  0x5b   : > { %p2588_p7 = pnand %p2586_p5, %p2583_p2 }
  0x5d   : > { %2591 = shalt.err (!%p2588_p7)
}
  0x5e   : > { %s2592_s13 = scalar_lea.vmem %s235_s9, 1024  ;;  %p2600_p11 = scmp.lt.s32.totalorder %s235_s9, %s235_s9 }
  0x5f   : > { %p2593_p9 = scmp.ne.s32.totalorder %s235_s9, %s2592_s13  ;;  %p2601_p12 = scmp.lt.s32.totalorder %s2592_s13, %s2592_s13 }
  0x61   : > { %p2595_p4 = pnand %p2593_p9, %p2882_p8  ;;  %p2602_p1 = por %p2601_p12, %p2600_p11 }
  0x63   : > { %p2596_p10 = pneg %p2595_p4 }
  0x65   : > { %p2603_p3 = pnand %p2602_p1, %p2596_p10 }
  0x67   : > { %2606 = shalt.err (!%p2603_p3)
}
  0x68   : > { %2350 = dma.hbm_to_vmem [thread:$0]  (!%p2866_p6), %s3344_s2, 1024, %s235_s9, [#allocation6], %s2776_s23, %s2776_s23, %s2777_s28  }
  0x69   : > { %s2607_s16 = scalar_lea.hbm %s3346_s4, 512 }
  0x6a   : > { %p2608_p1 = scmp.ne.s32.totalorder %s3346_s4, %s2607_s16  ;;  %p2614_p0 = scmp.lt.u32.totalorder %s2607_s16, %s3346_s4 }
  0x6c   : > { %p2610_p3 = pnand %p2608_p1, %p2882_p8 }
  0x6e   : > { %p2611_p13 = pneg %p2610_p3 }
  0x70   : > { %p2616_p2 = pnand %p2614_p0, %p2611_p13 }
  0x72   : > { %2619 = shalt.err (!%p2616_p2)
}
  0x73   : > { %s2620_s21 = scalar_lea.vmem %s261_s14, 512  ;;  %p2628_p4 = scmp.lt.s32.totalorder %s261_s14, %s261_s14 }
  0x74   : > { %p2621_p5 = scmp.ne.s32.totalorder %s261_s14, %s2620_s21  ;;  %p2629_p10 = scmp.lt.s32.totalorder %s2620_s21, %s2620_s21 }
  0x76   : > { %p2623_p7 = pnand %p2621_p5, %p2882_p8  ;;  %p2630_p11 = por %p2629_p10, %p2628_p4 }
  0x78   : > { %p2624_p9 = pneg %p2623_p7 }
  0x7a   : > { %p2631_p12 = pnand %p2630_p11, %p2624_p9 }
  0x7c   : > { %2634 = shalt.err (!%p2631_p12)
}
  0x7d   : > { %2356 = dma.hbm_to_vmem [thread:$0]  (!%p2866_p6), %s3346_s4, 512, %s261_s14, [#allocation9], %s2776_s23, %s2776_s23, %s2777_s28  }
  0x7e   : > { %s2780_s29 = smov [#allocation13]   ;;  %s2635_s16 = scalar_lea.hbm %s3348_s6, 16 }
  0x7f   : > { %s287_s22 = sshll.u32 %s2780_s29, 4  ;;  %p2636_p1 = scmp.ne.s32.totalorder %s3348_s6, %s2635_s16  ;;  %s288_s22 = int_to_ptr.vmem [resolvable:$true] %s287_s22 }
  0x80   : > { %p2642_p0 = scmp.lt.u32.totalorder %s2635_s16, %s3348_s6 }
  0x81   : > { %p2638_p3 = pnand %p2636_p1, %p2882_p8 }
  0x83   : > { %p2639_p13 = pneg %p2638_p3 }
  0x85   : > { %p2644_p2 = pnand %p2642_p0, %p2639_p13 }
  0x87   : > { %2647 = shalt.err (!%p2644_p2)
}
  0x88   : > { %s2648_s23 = scalar_lea.vmem %s288_s22, 16  ;;  %s2655_s28 = scalar_lea.vmem %s288_s22, 32 }
  0x89   : > { %p2649_p5 = scmp.ne.s32.totalorder %s288_s22, %s2648_s23  ;;  %p2656_p4 = scmp.lt.s32.totalorder %s288_s22, %s288_s22 }
  0x8a   : > { %p2657_p10 = scmp.lt.s32.totalorder %s2655_s28, %s2648_s23 }
  0x8b   : > { %p2651_p7 = pnand %p2649_p5, %p2882_p8 }
  0x8c   : > { %p2658_p11 = por %p2657_p10, %p2656_p4 }
  0x8d   : > { %p2652_p9 = pneg %p2651_p7 }
  0x8f   : > { %p2659_p12 = pnand %p2658_p11, %p2652_p9 }
  0x91   : > { %2662 = shalt.err (!%p2659_p12)
}
  0x92   : > { %2362 = dma.hbm_to_vmem [thread:$0]  (!%p2866_p6), %s3348_s6, 16, %s288_s22, [#allocation12]  }
  0x93   : > { %s1976_s19 = sadd.s32 4294967294, %s2771_s27   ;;  %s3020_s11 = sadd.s32 1, %s2771_s27  }
  0x94   : > { %s30_s9 = ssub.s32 %s2771_s27, %s3020_s11  ;;  %s33_s13 = sadd.s32 1, %s2767_s26 }
  0x95   : > { %p31_p8 = scmp.eq.s32.totalorder %s30_s9, 0  ;;  %p40_p1 = scmp.ne.s32.totalorder %s2767_s26, %s2763_s25 }
  0x96   : > { %p41_p3 = scmp.eq.s32.totalorder %s2771_s27, 0  ;;  %p46_p13 = scmp.ne.s32.totalorder %s2763_s25, %s2759_s24 }
  0x97   : > { %s3031_s29 = scalar_select %p31_p8, %s2767_s26, %s33_s13  }
  0x98   : > { %p3033_p0 = por %p41_p3, %p40_p1  ;;  %p3357_p2 = scmp.eq.s32.totalorder %s2850_s30, 0 }
  0x99   : > { %p196_p5 = scmp.eq.s32.totalorder %s2850_s30, 1  ;;  %p202_p7 = scmp.eq.s32.totalorder %s1976_s19, 1 }
  0x9a   : > { %p3039_p6 = por %p3357_p2, %p46_p13  ;;  %p2377_p9 = scmp.lt.s32.totalorder %s2771_s27, 2 }
  0x9b   : > { %s298_s15 = sand.u32 1, %s2767_s26   ;;  %p3046_p4 = por %p196_p5, %p40_p1 }
  0x9c   : > { %p3050_p10 = por %p202_p7, %p46_p13  ;;  %s1985_s18 = sshll.u32 %s298_s15, 4 }
  0x9d   : > { %s3359_s16 = scalar_select %p3046_p4, 1, 0 }
  0x9e   : > { %s3360_s17 = scalar_select %p3050_p10, 1, 0 }
  0x9f   : > { %s2058_s20 = sshll.u32 %s2771_s27, 8  ;;  %s302_s14 = scalar_lea.vmem [#allocation2], %s1985_s18 }
  0xa0   : > { %s3058_s28 = scalar_lea.hbm %s3342_s0, %s2058_s20  ;;  %s309_s21 = sshll.u32 %s302_s14, 4  ;;  %s3060_s21 = int_to_ptr.vmem [resolvable:$true] %s309_s21 }
  0xa1   : > { %p3064_p11 = pnand %p2377_p9, %p3033_p0  ;;  %s3068_s9 = scalar_lea.sflag [#allocation3], %s298_s15 }
  0xa2   : > { %s2663_s13 = scalar_lea.hbm %s3058_s28, 256  ;;  %s2668_s12 = scalar_lea.hbm %s3342_s0, 512 }
  0xa3   : > { %p2664_p12 = scmp.ne.s32.totalorder %s3058_s28, %s2663_s13  ;;  %p2665_p8 = pneg %p3064_p11 }
  0xa4   : > { %p2669_p13 = scmp.lt.u32.totalorder %s3058_s28, %s3342_s0  ;;  %p2670_p0 = scmp.lt.u32.totalorder %s2668_s12, %s2663_s13 }
  0xa5   : > { %p2666_p1 = pnand %p2665_p8, %p2664_p12  ;;  %p2672_p5 = scmp.lt.u32.totalorder %s2663_s13, %s3058_s28 }
  0xa6   : > { %p2671_p2 = por %p2670_p0, %p2669_p13 }
  0xa7   : > { %p2667_p3 = pneg %p2666_p1 }
  0xa8   : > { %p2673_p7 = por %p2672_p5, %p2671_p2 }
  0xaa   : > { %p2674_p9 = pnand %p2673_p7, %p2667_p3 }
  0xac   : > { %2677 = shalt.err (!%p2674_p9)
}
  0xad   : > { %s2678_s15 = scalar_lea.vmem %s3060_s21, 256  ;;  %s2781_s14 = smov [#allocation2]  }
  0xae   : > { %p2679_p12 = scmp.ne.s32.totalorder %s3060_s21, %s2678_s15  ;;  %s2683_s18 = sshll.u32 %s2781_s14, 4  ;;  %s2684_s18 = int_to_ptr.vmem [resolvable:$false] %s2683_s18 }
  0xaf   : > { %s2685_s20 = scalar_lea.vmem %s2684_s18, 512  ;;  %p2686_p4 = scmp.lt.s32.totalorder %s3060_s21, %s2684_s18 }
  0xb0   : > { %p2681_p1 = pnand %p2679_p12, %p2665_p8  ;;  %p2687_p13 = scmp.lt.s32.totalorder %s2685_s20, %s2678_s15 }
  0xb2   : > { %p2682_p10 = pneg %p2681_p1  ;;  %p2688_p0 = por %p2687_p13, %p2686_p4 }
  0xb4   : > { %p2689_p2 = pnand %p2688_p0, %p2682_p10 }
  0xb6   : > { %2692 = shalt.err (!%p2689_p2)
}
  0xb7   : > { %s2782_s13 = smov 128   ;;  %s2783_s12 = smov 8  }
  0xb8   : > { %2366 = dma.hbm_to_vmem [thread:$0]  (!%p3064_p11), %s3058_s28, 256, %s3060_s21, %s3068_s9, %s2782_s13, %s2782_s13, %s2783_s12  }
  0xb9   : > { %p3362_p8 = scmp.ne.s32.totalorder %s3353_s8, 0 }
  0xba   : > { %s3099_s10 = sand.u32 (!%p3362_p8), 1, %s2763_s25  }
  0xbb   : > { %321 = sbr.rel (%p3362_p8) target bundleno = 4138 (0x102a), region = 48  ;;  %s1989_s23 = sshll.u32 (!%p3362_p8), %s3099_s10, 4 }
  0xbc   : > { %s324_s15 = scalar_lea.sflag (!%p3362_p8), [#allocation3], %s3099_s10  ;;  %s327_s14 = scalar_lea.vmem (!%p3362_p8), [#allocation2], %s1989_s23 }
  0xc2   : > { %2738 = dma.done.wait (%p3039_p6), %s324_s15, 256  }
  0xc3   : > { %2740 = vsyncadd (%p3039_p6), %s324_s15, 4294967040  ;;  %p3363_p4 = scmp.eq.s32.totalorder %s2850_s30, 0 }
  0xc5   : > { %2742 = dma.done.wait (%p3363_p4), [#allocation6], 2048   ;;  %p3364_p10 = pmov %p3363_p4 }
  0xc6   : > { %p3365_p11 = pmov %p3363_p4 }
  0xc7   : > { %2744 = vsyncadd (%p3364_p10), [#allocation6], 4294965248 }
  0xc8   : > { %2746 = dma.done.wait (%p3365_p11), [#allocation9], 1536   ;;  %p3366_p3 = pmov %p3363_p4 }
  0xca   : > { %2748 = vsyncadd (%p3366_p3), [#allocation9], 4294965760  ;;  %p3367_p5 = pmov %p3366_p3 }
  0xcb   : > { %p3368_p7 = pmov %p3366_p3 }
  0xcc   : > { %2750 = dma.done.wait (%p3367_p5), [#allocation12], 1040  }
  0xcd   : > { %2752 = vsyncadd (%p3368_p7), [#allocation12], 4294966256  ;;  %v2784_v0 = vmov 0.0   ;;  %vm2785_vm0 = vmmov 0   ;;  %v2431_v1 = vld [vmem:[#allocation7] sm:$0xff]   ;;  %v2432_v2 = vld [vmem:[#allocation7 + $0x8] sm:$0xff]  }
  0xce   : > { %2148 = vmatprep.subr.bf16.mxu1 %v2784_v0  ;;  %2140 = vmatprep.subr.bf16.mxu0 %v2784_v0  ;;  %v2433_v3 = vld [vmem:[#allocation5] sm:$0xff]   ;;  %v384_v5 = vld [vmem:[%s327_s14 + $0x8] sm:$0xff]  ;;  %vm402_vm1 = vcmask 261120   ;;  %vm614_vm2 = vcmask 130048   ;;  %v2439_v47 = vld [vmem:[#allocation5 + $0x10] sm:$0xff]   ;;  %s2059_s8 = sshll.u32 %s2850_s30, 8 }
  0xcf   : > { %2152 = vmatprep.mubr.msk.bf16.mxu1 %vm2785_vm0, %v2784_v0  ;;  %2144 = vmatprep.mubr.msk.bf16.mxu0 %vm2785_vm0, %v2784_v0  ;;  %v383_v4 = vld [vmem:[%s327_s14] sm:$0xff]  ;;  %v2434_v6 = vld [vmem:[#allocation5 + $0x8] sm:$0xff]   ;;  %v2440_v48 = vld [vmem:[#allocation5 + $0x18] sm:$0xff]   ;;  %s381_s22 = scalar_lea.vmem [#allocation14], %s1989_s23  ;;  %s3294_s9 = scalar_lea.hbm %s3349_s7, %s2059_s8 }
  0xd0   : > { %2149 = vmatpush3.bf16.msra.mxu1 %v2431_v1  ;;  %2141 = vmatpush3.bf16.msra.mxu0 %v2433_v3  ;;  %v3128_v7 = vpack.c.bf16 %v384_v5, %v383_v4  ;;  %v2435_v19 = vld [vmem:[#allocation8] sm:$0xff]   ;;  %v2436_v20 = vld [vmem:[#allocation8 + $0x8] sm:$0xff]   ;;  %v2437_v55 = vld [vmem:[#allocation7 + $0x10] sm:$0xff]   ;;  %s1846_s28 = sshll.u32 %s381_s22, 4  ;;  %s1833_s30 = scalar_lea.sflag [#allocation4], %s3099_s10  ;;  %s3296_s28 = int_to_ptr.vmem [resolvable:$true] %s1846_s28 }
  0xd1   : > { %2150 = vmatprep.subr.bf16.mxu1 %v2784_v0  ;;  %2142 = vmatprep.subr.bf16.mxu0 %v2784_v0  ;;  %v2061_v21 = vld [vmem:[#allocation10] sm:$0xff]   ;;  %v2438_v57 = vld [vmem:[#allocation7 + $0x18] sm:$0xff]   ;;  %s2693_s18 = scalar_lea.vmem %s3296_s28, 256  ;;  %p3369_p9 = scmp.ne.s32.totalorder %s3359_s16, 0 }
  0xd2   : > { %v2062_v22 = vunpack.c.l.bf16 %v2061_v21  ;;  %v2063_v23 = vunpack.c.h.bf16 %v2061_v21  ;;  %p2694_p6 = scmp.ne.s32.totalorder %s3296_s28, %s2693_s18  ;;  %s2786_s20 = smov [#allocation14]  }
  0xd3   : > { %s2697_s13 = sshll.u32 %s2786_s20, 4  ;;  %s2698_s13 = int_to_ptr.vmem [resolvable:$false] %s2697_s13 }
  0xd4   : > { %2151 = vmatpush3.bf16.msra.mxu1 %v2432_v2  ;;  %2143 = vmatpush3.bf16.msra.mxu0 %v2434_v6  ;;  %p2695_p12 = pnand %p2694_p6, %p3369_p9  ;;  %s2699_s12 = scalar_lea.vmem %s2698_s13, 512 }
  0xd5   : > { %2164 = vmatprep.subr.bf16.mxu1 %v2784_v0  ;;  %2156 = vmatprep.subr.bf16.mxu0 %v2784_v0  ;;  %p2700_p13 = scmp.lt.s32.totalorder %s3296_s28, %s2698_s13  ;;  %p2701_p0 = scmp.lt.s32.totalorder %s2699_s12, %s2693_s18 }
  0xd6   : > { %p2696_p1 = pneg %p2695_p12 }
  0xd7   : > { %2153 = vmatmul.mubr.msk.bf16.vlgmr.msra.gmra.mrb[0].mxu1 %vm402_vm1, %v3128_v7  ;;  %2145 = vmatmul.mubr.msk.bf16.vlgmr.msra.gmra.mrb[0].mxu0 %vm402_vm1, %v3128_v7  ;;  %p2702_p2 = por %p2701_p0, %p2700_p13 }
  0xd8   : > { %2166 = vmatprep.mubr.msk.bf16.mxu1 %vm2785_vm0, %v2784_v0  ;;  %2160 = vmatprep.mubr.msk.bf16.mxu0 %vm2785_vm0, %v2784_v0 }
  0xd9   : > { %2157 = vmatpush3.bf16.msra.mxu0 %v2435_v19  ;;  %p2703_p8 = pnand %p2702_p2, %p2696_p1 }
  0xda   : > { %2158 = vmatprep.subr.bf16.mxu0 %v2784_v0 }
  0xdd   : > { %2159 = vmatpush3.bf16.msra.mxu0 %v2436_v20 }
  0xde   : > { %2170 = vmatprep.subr.bf16.mxu0 %v2784_v0 }
  0xe0   : > { %2161 = vmatmul.mubr.msk.bf16.vlgmr.msra.gmra.mrb[4].mxu0 %vm402_vm1, %v3128_v7 }
  0xe1   : > { %2172 = vmatprep.mubr.msk.bf16.mxu0 %vm2785_vm0, %v2784_v0 }
 0x1aa   : > { %v497_v8 = vpop.f32.mrb[0].mxu1  ;;  %v440_v11 = vpop.f32.mrb[0].mxu0 }
 0x1ab   : > { %v2154_v9 = vpop.f32.mrb[1].mxu1  ;;  %v2146_v14 = vpop.f32.mrb[1].mxu0 }
 0x1ac   : > { %v500_v10 = vpop.f32.mrb[2].mxu1  ;;  %v443_v15 = vpop.f32.mrb[2].mxu0  ;;  %v2065_v14 = vld [vmem:[#allocation10 + $0x8] sm:$0xff]  }
 0x1ad   : > { %v562_v12 = vpack.c.bf16 %v500_v10, %v497_v8  ;;  %v2155_v13 = vpop.f32.mrb[3].mxu1  ;;  %v561_v17 = vpack.c.bf16 %v443_v15, %v440_v11  ;;  %v2147_v18 = vpop.f32.mrb[3].mxu0  ;;  %v2066_v15 = vunpack.c.l.bf16 %v2065_v14 }
 0x1ae   : > { %v2442_v13 = vld [vmem:[#allocation8 + $0x18] sm:$0xff]  }
 0x1af   : > { %v571_v16 = vsel %vm402_vm1, %v562_v12, 0  ;;  %v2441_v12 = vld [vmem:[#allocation8 + $0x10] sm:$0xff]  }
 0x1b0   : > { %2165 = vmatpush3.bf16.xpose.msra.mxu1 %v571_v16  ;;  %v2067_v16 = vunpack.c.h.bf16 %v2065_v14 }
 0x1b1   : > { %2176 = vmatprep.subr.bf16.mxu1 %v2784_v0 }
 0x1b3   : > { %v554_v42 = vpop.f32.mrb[4].mxu0 }
 0x1b4   : > { %v2162_v43 = vpop.f32.mrb[5].mxu0 }
 0x1b5   : > { %v557_v44 = vpop.f32.mrb[6].mxu0 }
 0x1b6   : > { %v2163_v45 = vpop.f32.mrb[7].mxu0  ;;  %v638_v46 = vpack.c.bf16 %v557_v44, %v554_v42 }
 0x1b7   : > { %2167 = vmatmul.mubr.msk.bf16.vlgmr.msra.gmra.mrb[4].mxu1 %vm402_vm1, %v561_v17 }
 0x1b8   : > { %2180 = vmatprep.mubr.msk.bf16.mxu1 %vm2785_vm0, %v2784_v0  ;;  %2171 = vmatpush3.bf16.msra.mxu0 %v638_v46 }
 0x1b9   : > { %2184 = vmatprep.subr.bf16.mxu0 %v2784_v0  ;;  %2177 = vmatpush3.bf16.msra.mxu1 %v2439_v47  ;;  %v2443_v47 = vld [vmem:[#allocation11] sm:$0xff]  }
 0x1ba   : > { %2178 = vmatprep.subr.bf16.mxu1 %v2784_v0 }
 0x1bd   : > { %2179 = vmatpush3.bf16.msra.mxu1 %v2440_v48 }
 0x1be   : > { %2192 = vmatprep.subr.bf16.mxu1 %v2784_v0 }
 0x1c0   : > { %2181 = vmatmul.mubr.msk.bf16.vlgmr.msra.gmra.mrb[8].mxu1 %vm402_vm1, %v3128_v7 }
 0x1c1   : > { %2196 = vmatprep.mubr.msk.bf16.mxu1 %vm2785_vm0, %v2784_v0  ;;  %2193 = vmatpush3.bf16.msra.mxu1 %v2441_v12 }
 0x1c2   : > { %2194 = vmatprep.subr.bf16.mxu1 %v2784_v0 }
 0x1c5   : > { %2195 = vmatpush3.bf16.msra.mxu1 %v2442_v13 }
 0x1c6   : > { %2206 = vmatprep.subr.bf16.mxu1 %v2784_v0 }
 0x1c8   : > { %2197 = vmatmul.mubr.msk.bf16.vlgmr.msra.gmra.mrb[12].mxu1 %vm402_vm1, %v3128_v7 }
 0x1c9   : > { %2208 = vmatprep.mubr.msk.bf16.mxu1 %vm2785_vm0, %v2784_v0 }
 0x28a   : > { %v607_v24 = vpop.f32.mrb[4].mxu1 }
 0x28b   : > { %v608_v25 = vadd.f32 %v2062_v22, %v607_v24  ;;  %v2168_v26 = vpop.f32.mrb[5].mxu1 }
 0x28c   : > { %v610_v27 = vpop.f32.mrb[6].mxu1 }
 0x28d   : > { %v611_v28 = vadd.f32 %v2063_v23, %v610_v27  ;;  %v2169_v29 = vpop.f32.mrb[7].mxu1  ;;  %v615_v30 = vsel %vm614_vm2, %v608_v25, -inf }
 0x28e   : > { %616 = vmax.xlane.f32.xlu0 %v615_v30 }
 0x28f   : > { %v618_v31 = vsel %vm614_vm2, %v611_v28, -inf }
 0x292   : > { %619 = vmax.xlane.f32.xlu0 %v618_v31 }
 0x293   : > { %v739_v58 = vpop.f32.mrb[8].mxu1 }
 0x294   : > { %v2182_v59 = vpop.f32.mrb[9].mxu1 }
 0x295   : > { %v742_v60 = vpop.f32.mrb[10].mxu1  ;;  %v2450_v59 = vld [vmem:[#allocation5 + $0x28] sm:$0xff]  }
 0x296   : > { %v862_v61 = vpack.c.bf16 %v742_v60, %v739_v58  ;;  %v2183_v62 = vpop.f32.mrb[11].mxu1 }
 0x31b   : > { %v617_v32 = vpop.xlane.xlu0 %616 }
 0x31c   : > { %v621_v33 = vsub.f32 %v608_v25, %v617_v32 }
 0x31e   : > { %v623_v34 = vmul.f32 1.442695, %v621_v33 }
 0x31f   : > { %v620_v35 = vpop.xlane.xlu0 %619 }
 0x320   : > { %2463 = vpow2.f32 %v623_v34  ;;  %v622_v36 = vsub.f32 %v611_v28, %v620_v35  ;;  %v855_v35 = vpop.f32.mrb[12].mxu1 }
 0x322   : > { %v625_v37 = vmul.f32 1.442695, %v622_v36  ;;  %v2198_v36 = vpop.f32.mrb[13].mxu1 }
 0x324   : > { %2465 = vpow2.f32 %v625_v37  ;;  %v858_v37 = vpop.f32.mrb[14].mxu1 }
 0x32a   : > { %v2464_v38 = vpop.eup %2463 }
 0x32b   : > { %v627_v39 = vsel %vm614_vm2, %v2464_v38, 0.0 }
 0x32c   : > { %628 = vadd.xlane.f32.xlu1 %v627_v39  ;;  %v939_v39 = vpack.c.bf16 %v858_v37, %v855_v35 }
 0x32e   : > { %v2466_v40 = vpop.eup %2465  ;;  %2207 = vmatpush3.bf16.msra.mxu1 %v939_v39 }
 0x32f   : > { %v630_v41 = vsel %vm614_vm2, %v2466_v40, 0.0  ;;  %2220 = vmatprep.subr.bf16.mxu1 %v2784_v0 }
 0x330   : > { %631 = vadd.xlane.f32.xlu1 %v630_v41 }
 0x3b9   : > { %v629_v49 = vpop.xlane.xlu1 %628 }
 0x3ba   : > { %2467 = vrcp.f32 %v629_v49  ;;  %v2444_v49 = vld [vmem:[#allocation11 + $0x8] sm:$0xff]  }
 0x3bd   : > { %v632_v50 = vpop.xlane.xlu1 %631 }
 0x3be   : > { %2469 = vrcp.f32 %v632_v50  ;;  %v2445_v50 = vld [vmem:[#allocation7 + $0x20] sm:$0xff]  }
 0x3c4   : > { %v2468_v51 = vpop.eup %2467 }
 0x3c5   : > { %v635_v53 = vmul.f32 %v2468_v51, %v2464_v38  ;;  %v2199_v38 = vpop.f32.mrb[15].mxu1  ;;  %v2447_v51 = vld [vmem:[#allocation7 + $0x28] sm:$0xff]  }
 0x3c8   : > { %v2470_v52 = vpop.eup %2469 }
 0x3c9   : > { %v636_v54 = vmul.f32 %v2470_v52, %v2466_v40  ;;  %v2446_v40 = vld [vmem:[#allocation11 + $0x10] sm:$0xff]   ;;  %v2448_v52 = vld [vmem:[#allocation11 + $0x18] sm:$0xff]  }
 0x3cb   : > { %v637_v56 = vpack.c.bf16 %v636_v54, %v635_v53 }
 0x3cd   : > { %2173 = vmatmul.mubr.msk.bf16.vlgmr.msra.gmra.mrb[8].mxu0 %vm614_vm2, %v637_v56  ;;  %v2449_v56 = vld [vmem:[#allocation5 + $0x20] sm:$0xff]  }
 0x3ce   : > { %2185 = vmatpush3.bf16.msra.mxu0 %v2437_v55  ;;  %2188 = vmatprep.mubr.msk.bf16.mxu0 %vm2785_vm0, %v2784_v0 }
 0x3cf   : > { %2186 = vmatprep.subr.bf16.mxu0 %v2784_v0 }
 0x3d2   : > { %2187 = vmatpush3.bf16.msra.mxu0 %v2438_v57 }
 0x3d3   : > { %2200 = vmatprep.subr.bf16.mxu0 %v2784_v0 }
 0x3d5   : > { %2189 = vmatmul.mubr.msk.bf16.vlgmr.msra.gmra.mrb[12].mxu0 %vm402_vm1, %v3128_v7 }
 0x3d6   : > { %2202 = vmatprep.mubr.msk.bf16.mxu0 %vm2785_vm0, %v2784_v0 }
 0x4a0   : > { %v3172_v63 = vpop.f32.mrb[8].mxu0 }
 0x4a1   : > { %v2174_v1 = vpop.f32.mrb[9].mxu0 }
 0x4a2   : > { %v3174_v2 = vpop.f32.mrb[10].mxu0 }
 0x4a3   : > { %v683_v3 = vpack.c.bf16 %v3174_v2, %v3172_v63  ;;  %v2175_v4 = vpop.f32.mrb[11].mxu0 }
 0x4a8   : > { %v797_v5 = vpop.f32.mrb[12].mxu0 }
 0x4a9   : > { %v2190_v6 = vpop.f32.mrb[13].mxu0 }
 0x4aa   : > { %v800_v8 = vpop.f32.mrb[14].mxu0 }
 0x4ab   : > { %v863_v9 = vpack.c.bf16 %v800_v8, %v797_v5  ;;  %v2191_v10 = vpop.f32.mrb[15].mxu0 }
 0x4ad   : > { %v873_v11 = vsel %vm402_vm1, %v863_v9, 0 }
 0x4ae   : > { %2201 = vmatpush3.bf16.xpose.msra.mxu0 %v873_v11 }
 0x4af   : > { %2212 = vmatprep.subr.bf16.mxu0 %v2784_v0 }
 0x4b5   : > { %2203 = vmatmul.mubr.msk.bf16.vlgmr.msra.gmra.mrb[16].mxu0 %vm402_vm1, %v862_v61 }
 0x4b6   : > { %2216 = vmatprep.mubr.msk.bf16.mxu0 %vm2785_vm0, %v2784_v0  ;;  %2213 = vmatpush3.bf16.msra.mxu0 %v2446_v40 }
 0x4b7   : > { %2214 = vmatprep.subr.bf16.mxu0 %v2784_v0 }
 0x4ba   : > { %2215 = vmatpush3.bf16.msra.mxu0 %v2448_v52 }
 0x4bb   : > { %2228 = vmatprep.subr.bf16.mxu0 %v2784_v0 }
 0x588   : > { %v909_v17 = vpop.f32.mrb[16].mxu0 }
 0x589   : > { %v910_v18 = vadd.f32 %v2066_v15, %v909_v17  ;;  %v2204_v19 = vpop.f32.mrb[17].mxu0 }
 0x58a   : > { %v912_v20 = vpop.f32.mrb[18].mxu0  ;;  %v2451_v19 = vld [vmem:[#allocation8 + $0x20] sm:$0xff]  }
 0x58b   : > { %v913_v21 = vadd.f32 %v2067_v16, %v912_v20  ;;  %v2205_v22 = vpop.f32.mrb[19].mxu0  ;;  %v916_v23 = vsel %vm614_vm2, %v910_v18, -inf  ;;  %v2452_v20 = vld [vmem:[#allocation8 + $0x28] sm:$0xff]  }
 0x58c   : > { %917 = vmax.xlane.f32.xlu0 %v916_v23 }
 0x58d   : > { %v919_v24 = vsel %vm614_vm2, %v913_v21, -inf }
 0x58e   : > { %920 = vmax.xlane.f32.xlu1 %v919_v24 }
 0x619   : > { %v918_v25 = vpop.xlane.xlu0 %917 }
 0x61a   : > { %v922_v26 = vsub.f32 %v910_v18, %v918_v25 }
 0x61b   : > { %v921_v27 = vpop.xlane.xlu1 %920 }
 0x61c   : > { %v924_v28 = vmul.f32 1.442695, %v922_v26  ;;  %v923_v29 = vsub.f32 %v913_v21, %v921_v27  ;;  %v2069_v21 = vld [vmem:[#allocation10 + $0x10] sm:$0xff]  }
 0x61d   : > { %v2070_v22 = vunpack.c.l.bf16 %v2069_v21  ;;  %v2071_v23 = vunpack.c.h.bf16 %v2069_v21 }
 0x61e   : > { %2471 = vpow2.f32 %v924_v28  ;;  %v926_v30 = vmul.f32 1.442695, %v923_v29 }
 0x620   : > { %2473 = vpow2.f32 %v926_v30 }
 0x628   : > { %v2472_v31 = vpop.eup %2471 }
 0x629   : > { %v928_v32 = vsel %vm614_vm2, %v2472_v31, 0.0 }
 0x62a   : > { %v2474_v33 = vpop.eup %2473  ;;  %929 = vadd.xlane.f32.xlu0 %v928_v32 }
 0x62b   : > { %v931_v34 = vsel %vm614_vm2, %v2474_v33, 0.0 }
 0x62c   : > { %932 = vadd.xlane.f32.xlu1 %v931_v34 }
 0x6b7   : > { %v930_v41 = vpop.xlane.xlu0 %929 }
 0x6b8   : > { %2475 = vrcp.f32 %v930_v41 }
 0x6b9   : > { %v933_v42 = vpop.xlane.xlu1 %932 }
 0x6ba   : > { %2477 = vrcp.f32 %v933_v42 }
 0x6c2   : > { %v2476_v43 = vpop.eup %2475 }
 0x6c3   : > { %v936_v45 = vmul.f32 %v2476_v43, %v2472_v31 }
 0x6c4   : > { %v2478_v44 = vpop.eup %2477 }
 0x6c5   : > { %v937_v46 = vmul.f32 %v2478_v44, %v2474_v33 }
 0x6c7   : > { %v938_v48 = vpack.c.bf16 %v937_v46, %v936_v45 }
 0x6c9   : > { %2209 = vmatmul.mubr.msk.bf16.vlgmr.msra.gmra.mrb[16].mxu1 %vm614_vm2, %v938_v48 }
 0x6ca   : > { %2221 = vmatpush3.bf16.msra.mxu1 %v2443_v47  ;;  %2224 = vmatprep.mubr.msk.bf16.mxu1 %vm2785_vm0, %v2784_v0  ;;  %v2453_v47 = vld [vmem:[#allocation11 + $0x20] sm:$0xff]  }
 0x6cb   : > { %2222 = vmatprep.subr.bf16.mxu1 %v2784_v0 }
 0x6ce   : > { %2223 = vmatpush3.bf16.msra.mxu1 %v2444_v49 }
 0x6cf   : > { %2236 = vmatprep.subr.bf16.mxu1 %v2784_v0 }
 0x6d1   : > { %2225 = vmatmul.mubr.msk.bf16.vlgmr.msra.gmra.mrb[20].mxu1 %vm402_vm1, %v683_v3 }
 0x6d2   : > { %2237 = vmatpush3.bf16.msra.mxu1 %v2445_v50  ;;  %2240 = vmatprep.mubr.msk.bf16.mxu1 %vm2785_vm0, %v2784_v0 }
 0x6d3   : > { %2238 = vmatprep.subr.bf16.mxu1 %v2784_v0 }
 0x6d6   : > { %2239 = vmatpush3.bf16.msra.mxu1 %v2447_v51 }
 0x6d7   : > { %2252 = vmatprep.subr.bf16.mxu1 %v2784_v0 }
 0x6d9   : > { %2241 = vmatmul.mubr.msk.bf16.vlgmr.msra.gmra.mrb[24].mxu1 %vm402_vm1, %v3128_v7 }
 0x6da   : > { %2254 = vmatprep.mubr.msk.bf16.mxu1 %vm2785_vm0, %v2784_v0 }
 0x79c   : > { %v977_v53 = vpop.f32.mrb[16].mxu1 }
 0x79d   : > { %v2210_v54 = vpop.f32.mrb[17].mxu1 }
 0x79e   : > { %v980_v55 = vpop.f32.mrb[18].mxu1 }
 0x79f   : > { %v984_v57 = vpack.c.bf16 %v980_v55, %v977_v53  ;;  %v2211_v58 = vpop.f32.mrb[19].mxu1  ;;  %v2454_v55 = vld [vmem:[#allocation11 + $0x28] sm:$0xff]  }
 0x7a1   : > { %2217 = vmatmul.mubr.msk.bf16.vlgmr.msra.gmra.mrb[20].mxu0 %vm402_vm1, %v984_v57  ;;  %v2458_v57 = vld [vmem:[#allocation5 + $0x38] sm:$0xff]  }
 0x7a2   : > { %2229 = vmatpush3.bf16.msra.mxu0 %v2449_v56  ;;  %2232 = vmatprep.mubr.msk.bf16.mxu0 %vm2785_vm0, %v2784_v0  ;;  %v2457_v56 = vld [vmem:[#allocation5 + $0x30] sm:$0xff]  }
 0x7a3   : > { %2230 = vmatprep.subr.bf16.mxu0 %v2784_v0 }
 0x7a4   : > { %v1095_v60 = vpop.f32.mrb[20].mxu1 }
 0x7a5   : > { %v2226_v61 = vpop.f32.mrb[21].mxu1 }
 0x7a6   : > { %v1098_v62 = vpop.f32.mrb[22].mxu1  ;;  %2231 = vmatpush3.bf16.msra.mxu0 %v2450_v59  ;;  %v2455_v61 = vld [vmem:[#allocation7 + $0x30] sm:$0xff]  }
 0x7a7   : > { %v2227_v63 = vpop.f32.mrb[23].mxu1  ;;  %2244 = vmatprep.subr.bf16.mxu0 %v2784_v0 }
 0x7a9   : > { %2233 = vmatmul.mubr.msk.bf16.vlgmr.msra.gmra.mrb[24].mxu0 %vm402_vm1, %v3128_v7 }
 0x7aa   : > { %2248 = vmatprep.mubr.msk.bf16.mxu0 %vm2785_vm0, %v2784_v0  ;;  %2245 = vmatpush3.bf16.msra.mxu0 %v2451_v19 }
 0x7ab   : > { %2246 = vmatprep.subr.bf16.mxu0 %v2784_v0 }
 0x7ac   : > { %v1211_v1 = vpop.f32.mrb[24].mxu1 }
 0x7ad   : > { %v2242_v2 = vpop.f32.mrb[25].mxu1 }
 0x7ae   : > { %v1214_v3 = vpop.f32.mrb[26].mxu1  ;;  %2247 = vmatpush3.bf16.msra.mxu0 %v2452_v20 }
 0x7af   : > { %v1277_v4 = vpack.c.bf16 %v1214_v3, %v1211_v1  ;;  %v2243_v5 = vpop.f32.mrb[27].mxu1  ;;  %2258 = vmatprep.subr.bf16.mxu0 %v2784_v0  ;;  %v2456_v1 = vld [vmem:[#allocation7 + $0x38] sm:$0xff]  }
 0x7b1   : > { %v1287_v6 = vsel %vm402_vm1, %v1277_v4, 0  ;;  %2249 = vmatmul.mubr.msk.bf16.vlgmr.msra.gmra.mrb[28].mxu0 %vm402_vm1, %v3128_v7 }
 0x7b2   : > { %2253 = vmatpush3.bf16.xpose.msra.mxu1 %v1287_v6  ;;  %2260 = vmatprep.mubr.msk.bf16.mxu0 %vm2785_vm0, %v2784_v0 }
 0x7b3   : > { %2264 = vmatprep.subr.bf16.mxu1 %v2784_v0 }
 0x874   : > { %v1039_v8 = vpop.f32.mrb[20].mxu0 }
 0x875   : > { %v3224_v9 = vadd.f32 %v1095_v60, %v1039_v8  ;;  %v2218_v10 = vpop.f32.mrb[21].mxu0 }
 0x876   : > { %v1042_v11 = vpop.f32.mrb[22].mxu0 }
 0x877   : > { %v3226_v12 = vadd.f32 %v1098_v62, %v1042_v11  ;;  %v2219_v13 = vpop.f32.mrb[23].mxu0 }
 0x87c   : > { %v1153_v14 = vpop.f32.mrb[24].mxu0 }
 0x87d   : > { %v2234_v15 = vpop.f32.mrb[25].mxu0 }
 0x87e   : > { %v1156_v16 = vpop.f32.mrb[26].mxu0 }
 0x87f   : > { %v1276_v17 = vpack.c.bf16 %v1156_v16, %v1153_v14  ;;  %v2235_v18 = vpop.f32.mrb[27].mxu0 }
 0x881   : > { %2255 = vmatmul.mubr.msk.bf16.vlgmr.msra.gmra.mrb[28].mxu1 %vm402_vm1, %v1276_v17 }
 0x882   : > { %2268 = vmatprep.mubr.msk.bf16.mxu1 %vm2785_vm0, %v2784_v0  ;;  %2265 = vmatpush3.bf16.msra.mxu1 %v2453_v47  ;;  %v2461_v47 = vld [vmem:[#allocation11 + $0x30] sm:$0xff]  }
 0x883   : > { %2266 = vmatprep.subr.bf16.mxu1 %v2784_v0 }
 0x884   : > { %v1269_v42 = vpop.f32.mrb[28].mxu0 }
 0x885   : > { %v2250_v43 = vpop.f32.mrb[29].mxu0 }
 0x886   : > { %v1272_v44 = vpop.f32.mrb[30].mxu0  ;;  %2267 = vmatpush3.bf16.msra.mxu1 %v2454_v55  ;;  %v2462_v55 = vld [vmem:[#allocation11 + $0x38] sm:$0xff]  }
 0x887   : > { %v2251_v45 = vpop.f32.mrb[31].mxu0  ;;  %v1353_v46 = vpack.c.bf16 %v1272_v44, %v1269_v42  ;;  %2280 = vmatprep.subr.bf16.mxu1 %v2784_v0 }
 0x889   : > { %2259 = vmatpush3.bf16.msra.mxu0 %v1353_v46 }
 0x88a   : > { %2272 = vmatprep.subr.bf16.mxu0 %v2784_v0 }
 0x954   : > { %v1323_v24 = vpop.f32.mrb[28].mxu1 }
 0x955   : > { %v1324_v25 = vadd.f32 %v2070_v22, %v1323_v24  ;;  %v2256_v26 = vpop.f32.mrb[29].mxu1  ;;  %v2073_v22 = vld [vmem:[#allocation10 + $0x18] sm:$0xff]  }
 0x956   : > { %v1326_v27 = vpop.f32.mrb[30].mxu1  ;;  %v2075_v24 = vunpack.c.h.bf16 %v2073_v22 }
 0x957   : > { %v1327_v28 = vadd.f32 %v2071_v23, %v1326_v27  ;;  %v2257_v29 = vpop.f32.mrb[31].mxu1  ;;  %v1330_v30 = vsel %vm614_vm2, %v1324_v25, -inf  ;;  %v2074_v23 = vunpack.c.l.bf16 %v2073_v22 }
 0x958   : > { %1331 = vmax.xlane.f32.xlu0 %v1330_v30 }
 0x959   : > { %v1333_v31 = vsel %vm614_vm2, %v1327_v28, -inf }
 0x95a   : > { %1334 = vmax.xlane.f32.xlu1 %v1333_v31 }
 0x9e5   : > { %v1332_v32 = vpop.xlane.xlu0 %1331 }
 0x9e6   : > { %v1336_v33 = vsub.f32 %v1324_v25, %v1332_v32 }
 0x9e7   : > { %v1335_v34 = vpop.xlane.xlu1 %1334 }
 0x9e8   : > { %v1338_v35 = vmul.f32 1.442695, %v1336_v33  ;;  %v1337_v36 = vsub.f32 %v1327_v28, %v1335_v34 }
 0x9ea   : > { %2479 = vpow2.f32 %v1338_v35  ;;  %v1340_v37 = vmul.f32 1.442695, %v1337_v36 }
 0x9ec   : > { %2481 = vpow2.f32 %v1340_v37 }
 0x9f4   : > { %v2480_v38 = vpop.eup %2479 }
 0x9f5   : > { %v1342_v39 = vsel %vm614_vm2, %v2480_v38, 0.0 }
 0x9f6   : > { %v2482_v40 = vpop.eup %2481  ;;  %1343 = vadd.xlane.f32.xlu0 %v1342_v39 }
 0x9f7   : > { %v1345_v41 = vsel %vm614_vm2, %v2482_v40, 0.0 }
 0x9f8   : > { %1346 = vadd.xlane.f32.xlu1 %v1345_v41 }
 0xa83   : > { %v1344_v48 = vpop.xlane.xlu0 %1343 }
 0xa84   : > { %2483 = vrcp.f32 %v1344_v48 }
 0xa85   : > { %v1347_v49 = vpop.xlane.xlu1 %1346 }
 0xa86   : > { %2485 = vrcp.f32 %v1347_v49 }
 0xa8e   : > { %v2484_v50 = vpop.eup %2483 }
 0xa8f   : > { %v1350_v52 = vmul.f32 %v2484_v50, %v2480_v38 }
 0xa90   : > { %v2486_v51 = vpop.eup %2485 }
 0xa91   : > { %v1351_v53 = vmul.f32 %v2486_v51, %v2482_v40 }
 0xa93   : > { %v1352_v54 = vpack.c.bf16 %v1351_v53, %v1350_v52 }
 0xa95   : > { %2261 = vmatmul.mubr.msk.bf16.vlgmr.msra.gmra.mrb[32].mxu0 %vm614_vm2, %v1352_v54 }
 0xa96   : > { %2276 = vmatprep.mubr.msk.bf16.mxu0 %vm2785_vm0, %v2784_v0  ;;  %2273 = vmatpush3.bf16.msra.mxu0 %v2457_v56 }
 0xa97   : > { %2274 = vmatprep.subr.bf16.mxu0 %v2784_v0 }
 0xa9a   : > { %2275 = vmatpush3.bf16.msra.mxu0 %v2458_v57 }
 0xa9b   : > { %2288 = vmatprep.subr.bf16.mxu0 %v2784_v0 }
 0xa9d   : > { %2277 = vmatmul.mubr.msk.bf16.vlgmr.msra.gmra.mrb[36].mxu0 %vm402_vm1, %v3128_v7 }
 0xa9e   : > { %2292 = vmatprep.mubr.msk.bf16.mxu0 %vm2785_vm0, %v2784_v0 }
 0xb68   : > { %v1391_v58 = vpop.f32.mrb[32].mxu0 }
 0xb69   : > { %v2262_v59 = vpop.f32.mrb[33].mxu0 }
 0xb6a   : > { %v1394_v60 = vpop.f32.mrb[34].mxu0 }
 0xb6b   : > { %v1398_v62 = vpack.c.bf16 %v1394_v60, %v1391_v58  ;;  %v2263_v63 = vpop.f32.mrb[35].mxu0  ;;  %v1824_v60 = vlaneseq }
 0xb6d   : > { %2269 = vmatmul.mubr.msk.bf16.vlgmr.msra.gmra.mrb[32].mxu1 %vm402_vm1, %v1398_v62  ;;  %v1822_v62 = vld [vmem:[#allocation13] sm:$0x1] }
 0xb6e   : > { %2281 = vmatpush3.bf16.msra.mxu1 %v2455_v61  ;;  %2284 = vmatprep.mubr.msk.bf16.mxu1 %vm2785_vm0, %v2784_v0  ;;  %v1825_v61 = vshrl.u32 %v1824_v60, 7  ;;  %v1823_v63 = vunpack.c.l.bf16 %v1822_v62 }
 0xb6f   : > { %2282 = vmatprep.subr.bf16.mxu1 %v2784_v0 }
 0xb70   : > { %v1513_v2 = vpop.f32.mrb[36].mxu0 }
 0xb71   : > { %v2278_v3 = vpop.f32.mrb[37].mxu0 }
 0xb72   : > { %2283 = vmatpush3.bf16.msra.mxu1 %v2456_v1  ;;  %v1516_v4 = vpop.f32.mrb[38].mxu0  ;;  %v1826_v1 = vsub.s32 0, %v1825_v61 }
 0xb73   : > { %2296 = vmatprep.subr.bf16.mxu1 %v2784_v0  ;;  %v1636_v5 = vpack.c.bf16 %v1516_v4, %v1513_v2  ;;  %v2279_v6 = vpop.f32.mrb[39].mxu0 }
 0xb74   : > { %v1827_v2 = vrot.slane %v1823_v63, %v1826_v1 }
 0xb75   : > { %2285 = vmatmul.mubr.msk.bf16.vlgmr.msra.gmra.mrb[36].mxu1 %vm402_vm1, %v3128_v7 }
 0xb76   : > { %2298 = vmatprep.mubr.msk.bf16.mxu1 %vm2785_vm0, %v2784_v0 }
 0xc40   : > { %v1453_v8 = vpop.f32.mrb[32].mxu1 }
 0xc41   : > { %v3263_v10 = vadd.f32 %v1453_v8, %v3224_v9  ;;  %v2270_v11 = vpop.f32.mrb[33].mxu1  ;;  %v2459_v9 = vld [vmem:[#allocation8 + $0x30] sm:$0xff]  }
 0xc42   : > { %v1456_v13 = vpop.f32.mrb[34].mxu1  ;;  %2289 = vmatpush3.bf16.msra.mxu0 %v2459_v9 }
 0xc43   : > { %v3266_v14 = vadd.f32 %v1456_v13, %v3226_v12  ;;  %v2271_v15 = vpop.f32.mrb[35].mxu1  ;;  %v2460_v12 = vld [vmem:[#allocation8 + $0x38] sm:$0xff]   ;;  %2290 = vmatprep.subr.bf16.mxu0 %v2784_v0 }
 0xc46   : > { %2291 = vmatpush3.bf16.msra.mxu0 %v2460_v12 }
 0xc47   : > { %2302 = vmatprep.subr.bf16.mxu0 %v2784_v0 }
 0xc48   : > { %v1571_v16 = vpop.f32.mrb[36].mxu1 }
 0xc49   : > { %v2286_v17 = vpop.f32.mrb[37].mxu1  ;;  %2293 = vmatmul.mubr.msk.bf16.vlgmr.msra.gmra.mrb[40].mxu0 %vm402_vm1, %v3128_v7 }
 0xc4a   : > { %v1574_v18 = vpop.f32.mrb[38].mxu1  ;;  %2304 = vmatprep.mubr.msk.bf16.mxu0 %vm2785_vm0, %v2784_v0 }
 0xc4b   : > { %v1637_v19 = vpack.c.bf16 %v1574_v18, %v1571_v16  ;;  %v2287_v20 = vpop.f32.mrb[39].mxu1 }
 0xc4d   : > { %v1647_v21 = vsel %vm402_vm1, %v1637_v19, 0 }
 0xc4e   : > { %2297 = vmatpush3.bf16.xpose.msra.mxu1 %v1647_v21 }
 0xc4f   : > { %2308 = vmatprep.subr.bf16.mxu1 %v2784_v0 }
 0xc55   : > { %2299 = vmatmul.mubr.msk.bf16.vlgmr.msra.gmra.mrb[40].mxu1 %vm402_vm1, %v1636_v5 }
 0xc56   : > { %2312 = vmatprep.mubr.msk.bf16.mxu1 %vm2785_vm0, %v2784_v0  ;;  %2309 = vmatpush3.bf16.msra.mxu1 %v2461_v47 }
 0xc57   : > { %2310 = vmatprep.subr.bf16.mxu1 %v2784_v0 }
 0xc5a   : > { %2311 = vmatpush3.bf16.msra.mxu1 %v2462_v55 }
 0xd1c   : > { %v1629_v42 = vpop.f32.mrb[40].mxu0 }
 0xd1d   : > { %v2294_v43 = vpop.f32.mrb[41].mxu0 }
 0xd1e   : > { %v1632_v44 = vpop.f32.mrb[42].mxu0 }
 0xd1f   : > { %v2295_v45 = vpop.f32.mrb[43].mxu0  ;;  %v1713_v46 = vpack.c.bf16 %v1632_v44, %v1629_v42 }
 0xd21   : > { %2303 = vmatpush3.bf16.msra.mxu0 %v1713_v46 }
 0xd28   : > { %v1683_v25 = vpop.f32.mrb[40].mxu1 }
 0xd29   : > { %v1684_v26 = vadd.f32 %v2074_v23, %v1683_v25  ;;  %v2300_v27 = vpop.f32.mrb[41].mxu1 }
 0xd2a   : > { %v1686_v28 = vpop.f32.mrb[42].mxu1 }
 0xd2b   : > { %v1687_v29 = vadd.f32 %v2075_v24, %v1686_v28  ;;  %v2301_v30 = vpop.f32.mrb[43].mxu1  ;;  %v1690_v31 = vsel %vm614_vm2, %v1684_v26, -inf }
 0xd2c   : > { %1691 = vmax.xlane.f32.xlu0 %v1690_v31 }
 0xd2d   : > { %v1693_v32 = vsel %vm614_vm2, %v1687_v29, -inf }
 0xd2e   : > { %1694 = vmax.xlane.f32.xlu1 %v1693_v32 }
 0xdb9   : > { %v1692_v33 = vpop.xlane.xlu0 %1691 }
 0xdba   : > { %v1696_v7 = vsub.f32 %v1684_v26, %v1692_v33 }
 0xdbb   : > { %v1695_v34 = vpop.xlane.xlu1 %1694 }
 0xdbc   : > { %v1698_v35 = vmul.f32 1.442695, %v1696_v7  ;;  %v1697_v36 = vsub.f32 %v1687_v29, %v1695_v34 }
 0xdbe   : > { %2487 = vpow2.f32 %v1698_v35  ;;  %v1700_v37 = vmul.f32 1.442695, %v1697_v36 }
 0xdc0   : > { %2489 = vpow2.f32 %v1700_v37 }
 0xdc8   : > { %v2488_v38 = vpop.eup %2487 }
 0xdc9   : > { %v1702_v39 = vsel %vm614_vm2, %v2488_v38, 0.0 }
 0xdca   : > { %v2490_v40 = vpop.eup %2489  ;;  %1703 = vadd.xlane.f32.xlu0 %v1702_v39 }
 0xdcb   : > { %v1705_v41 = vsel %vm614_vm2, %v2490_v40, 0.0 }
 0xdcc   : > { %1706 = vadd.xlane.f32.xlu1 %v1705_v41 }
 0xe57   : > { %v1704_v48 = vpop.xlane.xlu0 %1703 }
 0xe58   : > { %2491 = vrcp.f32 %v1704_v48 }
 0xe59   : > { %v1707_v49 = vpop.xlane.xlu1 %1706 }
 0xe5a   : > { %2493 = vrcp.f32 %v1707_v49 }
 0xe62   : > { %v2492_v50 = vpop.eup %2491 }
 0xe63   : > { %v1710_v52 = vmul.f32 %v2492_v50, %v2488_v38 }
 0xe64   : > { %v2494_v51 = vpop.eup %2493 }
 0xe65   : > { %v1711_v53 = vmul.f32 %v2494_v51, %v2490_v40 }
 0xe67   : > { %v1712_v54 = vpack.c.bf16 %v1711_v53, %v1710_v52 }
 0xe69   : > { %2305 = vmatmul.mubr.msk.bf16.vlgmr.msra.gmra.mrb[44].mxu0 %vm614_vm2, %v1712_v54 }
 0xf3c   : > { %v1751_v56 = vpop.f32.mrb[44].mxu0 }
 0xf3d   : > { %v2306_v57 = vpop.f32.mrb[45].mxu0 }
 0xf3e   : > { %v1754_v58 = vpop.f32.mrb[46].mxu0 }
 0xf3f   : > { %v1758_v59 = vpack.c.bf16 %v1754_v58, %v1751_v56  ;;  %v2307_v0 = vpop.f32.mrb[47].mxu0 }
 0xf41   : > { %2313 = vmatmul.mubr.msk.bf16.vlgmr.msra.gmra.mrb[44].mxu1 %vm402_vm1, %v1758_v59 }
0x1014   : > { %v1813_v3 = vpop.f32.mrb[44].mxu1 }
0x1015   : > { %v1820_v4 = vadd.f32 %v1813_v3, %v3263_v10  ;;  %v2314_v5 = vpop.f32.mrb[45].mxu1 }
0x1016   : > { %v1816_v6 = vpop.f32.mrb[46].mxu1 }
0x1017   : > { %v1828_v8 = vadd.f32 %v1827_v2, %v1820_v4  ;;  %v1821_v11 = vadd.f32 %v1816_v6, %v3266_v14  ;;  %v2315_v13 = vpop.f32.mrb[47].mxu1 }
0x1019   : > { %1830 = vst.msk [vmem:[%s381_s22] sm:$0xff] %vm402_vm1, %v1828_v8  ;;  %v1829_v10 = vadd.f32 %v1827_v2, %v1821_v11 }
0x101b   : > { %1831 = vst.msk [vmem:[%s381_s22 + $0x8] sm:$0xff] %vm402_vm1, %v1829_v10 }
0x101c   : > { %2706 = shalt.err (!%p2703_p8)
}
0x101d   : > { %s2707_s23 = scalar_lea.hbm %s3294_s9, 256  ;;  %s2711_s8 = scalar_lea.hbm %s3349_s7, 512 }
0x101e   : > { %p2708_p4 = scmp.ne.s32.totalorder %s3294_s9, %s2707_s23  ;;  %p2712_p3 = scmp.lt.u32.totalorder %s3294_s9, %s3349_s7 }
0x101f   : > { %p2713_p5 = scmp.lt.u32.totalorder %s2711_s8, %s2707_s23  ;;  %p2715_p6 = scmp.lt.u32.totalorder %s2707_s23, %s3294_s9 }
0x1020   : > { %p2709_p10 = pnand %p2708_p4, %p3369_p9 }
0x1021   : > { %p2714_p7 = por %p2713_p5, %p2712_p3 }
0x1022   : > { %p2710_p11 = pneg %p2709_p10 }
0x1023   : > { %p2716_p12 = por %p2715_p6, %p2714_p7 }
0x1025   : > { %p2717_p1 = pnand %p2716_p12, %p2710_p11 }
0x1027   : > { %2720 = shalt.err (!%p2717_p1)
}
0x1028   : > { %s2787_s19 = smov 128   ;;  %s2788_s18 = smov 8  }
0x1029   : > { %2342 = dma.vmem_to_hbm [thread:$0]  (%p3369_p9), %s3296_s28, 256, %s3294_s9, %s1833_s30, %s2787_s19, %s2787_s19, %s2788_s18  }
0x102a PF: > { %s1861_s20 = sand.u32 1, %s2759_s24   ;;  %p3370_p13 = scmp.ne.s32.totalorder %s3360_s17, 0 }
0x102b   : > { %p3371_p0 = scmp.ge.s32.totalorder %s2771_s27, 2  ;;  %s1862_s13 = scalar_lea.sflag [#allocation4], %s1861_s20 }
0x102d   : > { %p2368_p2 = pnand %p3371_p0, %p3370_p13 }
0x102f   : > { %2754 = dma.done.wait (!%p2368_p2), %s1862_s13, 256  }
0x1030   : > { %2756 = vsyncadd (!%p2368_p2), %s1862_s13, 4294967040  ;;  %p23_p8 = scmp.ge.s32.totalorder %s3020_s11, 4   ;;  %s3372_s24 = smov %s2763_s25 }
0x1031   : > { %s3373_s25 = smov %s2767_s26  ;;  %s3374_s26 = smov %s3031_s29 }
0x1032   : > { %s3375_s27 = smov %s3020_s11  ;;  %25 = sbr.rel (!%p23_p8) target bundleno = 8 (0x8), region = 132 }
0x1039   :  { %1867 = vsyncpa [#allocation3], 1 }
0x103a   :  { %1869 = vsyncpa [#allocation3 + $0x1], 1 }
0x103b   :  { %1870 = vsyncpa [#allocation6], 1 }
0x103c   :  { %1871 = vsyncpa [#allocation9], 1 }
0x103d   :  { %1872 = vsyncpa [#allocation12], 1 }
0x103e   :  { %1873 = vsyncpa [#allocation4], 1 }
0x103f   :  { %1875 = vsyncpa [#allocation4 + $0x1], 1 }

</bundles_post_ra>
